<compile_context>
chip_gen: v7x
topology: tpu7x:2x2x1
jax: 0.10.0
libtpu: 0.0.40
codegen_flags: <defaults>
</compile_context>

<pallas_src>
import functools

import jax
import jax.numpy as jnp
import numpy as np
from jax.experimental import pallas as pl
from jax.experimental.pallas import tpu as pltpu


# ----------------------------- Pallas kernel --------------------------------
def _pse_kernel(x_ref,
                w1t_ref, b1_ref,            # mlp1 Linear1 (BN1 folded), w1 transposed (H1, C)
                w2_ref, b2_ref,             # mlp1 Linear2
                w3m_ref, w3s_ref, b3_ref,   # mlp2 Linear1 (BN2 folded), split mean/std halves
                w4_ref, b4_ref,             # mlp2 Linear2
                out_ref):
    tb, cs = x_ref.shape
    h1, c = w1t_ref.shape
    s = cs // c
    m = tb * s

    x = x_ref[...]                                   # (tb, C*S) f32
    w1t = w1t_ref[...]                               # (H1, C)

    # ---- mlp1 layer 1: C unrolled rank-1 VPU FMAs over static lane slices.
    # x stays lane-major (S in lanes); no lane-4 MXU LHS, no transpose of x.
    acc = x[:, 0:s][:, None, :] * w1t[:, 0:1]        # (tb, 1, S) * (H1, 1) -> (tb, H1, S)
    for ci in range(1, c):
        acc = acc + x[:, ci * s:(ci + 1) * s][:, None, :] * w1t[:, ci:ci + 1]

    # One batched minor-dims transpose (XLU) to per-pixel rows, then a free
    # leading collapse (lane dim unchanged) for the big MXU matmul.
    h = jnp.transpose(acc, (0, 2, 1)).reshape(m, h1)             # (M, H1)
    h = jnp.maximum(h + b1_ref[...], 0.0)                        # bias (BN folded) + ReLU

    # ---- mlp1 layer 2: one large-M MXU matmul -------------------------------
    h = jnp.dot(h, w2_ref[...], preferred_element_type=jnp.float32) + b2_ref[...]
    f1 = h.shape[-1]                                             # (M, F1)

    # ---- mean/std pooling over S (two-pass variance for stability) ----------
    h3 = h.reshape(tb, s, f1)                                    # free split (lane dim unchanged)
    mean = jnp.sum(h3, axis=1) * (1.0 / s)                       # (tb, F1)
    d = h3 - mean[:, None, :]
    denom = s - 1 if s > 1 else 1          # torch.std is unbiased; S==1 -> 0 (not NaN)
    var = jnp.sum(d * d, axis=1) * (1.0 / denom)
    std = jnp.sqrt(var)                                          # (tb, F1)

    # ---- mlp2: split-K contraction (mean/std kept separate, no lane concat) -
    y = (jnp.dot(mean, w3m_ref[...], preferred_element_type=jnp.float32)
         + jnp.dot(std, w3s_ref[...], preferred_element_type=jnp.float32)
         + b3_ref[...])
    y = jnp.maximum(y, 0.0)                                      # ReLU (BN folded)
    y = jnp.dot(y, w4_ref[...], preferred_element_type=jnp.float32) + b4_ref[...]

    out_ref[...] = y.astype(out_ref.dtype)


# ------------------------------- sizing --------------------------------------
def _round_up(v, m):
    return ((v + m - 1) // m) * m


def _per_row_vmem_bytes(S, C, H1, F1, H2, F_out):
    """Approx f32 VMEM bytes per (B*T) row in one grid step (lane/sublane
    padding, double-buffered in/out blocks, dominant live intermediates)."""
    lane = lambda n: _round_up(max(n, 1), 128)
    sub = lambda n: _round_up(max(n, 1), 8)
    return 4 * (
        2 * lane(C * S)                      # x block (double-buffered)
        + sub(H1) * lane(S)                  # layer-1 accumulator (H1, S) slab
        + S * lane(H1)                       # per-pixel activations (M, H1)
        + 2 * S * lane(F1)                   # mlp1 output + centered copy (2-pass var)
        + 4 * lane(F1)                       # mean / var / std temporaries
        + lane(H2) + lane(F_out)             # mlp2 intermediates
        + 2 * lane(F_out)                    # out block (double-buffered)
    )


def _vmem_budget_and_cap():
    """Generation-aware (tile budget, scoped-VMEM cap) in bytes."""
    phys = 128 << 20
    try:
        phys = int(getattr(pltpu.get_tpu_info(), "vmem_capacity_bytes", phys))
    except Exception:
        pass
    if phys <= (64 << 20):                   # v7x-class: 64 MiB per TensorCore
        return 16 << 20, (phys * 3) // 4     # leave headroom for compiler scratch
    return 40 << 20, 64 << 20                # v5e / v6e: 128 MiB physical


def _choose_tile_bt(BT, per_row_bytes, vmem_budget_bytes):
    """Multiple-of-8 tile over the B*T axis. Keeps >=2 grid steps per
    TensorCore (v7x megacore) for prefetch overlap when BT is large enough;
    BT is padded by the caller, so tile_bt need not divide BT."""
    cap = max(8, (vmem_budget_bytes // max(per_row_bytes, 1)) // 8 * 8)
    cap = min(cap, 2048)
    if BT >= 64:
        cap = min(cap, max(8, (BT // 8) // 8 * 8))   # >=8 steps (>=4 per v7x core)
    elif BT >= 32:
        cap = min(cap, max(8, (BT // 4) // 8 * 8))   # >=4 steps
    elif BT >= 16:
        cap = min(cap, 8)                            # 2 steps
    tile = min(cap, _round_up(BT, 8))
    return max(8, (tile // 8) * 8)


def _full_spec(p):
    nd = p.ndim
    return pl.BlockSpec(p.shape, lambda i, _nd=nd: (0,) * _nd)


# ------------------------------- wrapper -------------------------------------
@functools.partial(jax.jit, static_argnames=("tile_bt",))
def pixel_set_encoder(x, params, *, tile_bt=None):
    """x: [B, T, C, S] float32 -> [B, T, F_out] float32 (eval-mode BN)."""
    B, T, C, S = x.shape
    BT = B * T

    H1 = params["w1"].shape[1]
    F1 = params["w2"].shape[1]
    H2 = params["w3"].shape[1]
    F_out = params["w4"].shape[1]

    # Fold eval-mode BN into the adjacent Linear layers (tiny one-time work,
    # outside the kernel): relu((x@w1+b1)*s1+t1) == relu(x@(w1*s1)+(b1*s1+t1)).
    w1t = jnp.transpose(params["w1"] * params["s1"])     # (H1, C), transposed for the kernel
    b1f = params["b1"] * params["s1"] + params["t1"]     # (1, H1)
    w3f = params["w3"] * params["s2"]                    # (2*F1, H2)
    b3f = params["b3"] * params["s2"] + params["t2"]     # (1, H2)
    w3m, w3s = w3f[:F1], w3f[F1:]                        # split: kernel skips lane concat

    ordered = [w1t, b1f, params["w2"], params["b2"],
               w3m, w3s, b3f, params["w4"], params["b4"]]

    per_row = _per_row_vmem_bytes(S, C, H1, F1, H2, F_out)
    budget, vmem_cap = _vmem_budget_and_cap()
    if tile_bt is None:
        tile_bt = _choose_tile_bt(BT, per_row, budget)
    tile_bt = max(8, (int(tile_bt) // 8) * 8)

    # Pad B*T to a tile multiple; zero rows flow to finite values, sliced off below.
    BT_pad = _round_up(BT, tile_bt)

    # Free metadata reshape only -- no HBM transpose / relayout of x.
    xr = x.reshape(BT, C * S)
    if BT_pad != BT:
        xr = jnp.pad(xr, ((0, BT_pad - BT), (0, 0)))

    param_bytes = 4 * int(sum(int(np.prod(p.shape)) for p in ordered))
    vmem_limit = int(min(max(2 * (per_row * tile_bt + param_bytes), 32 << 20),
                         vmem_cap))

    flops = (2 * BT * S * (C * H1 + H1 * F1)
             + 2 * BT * (2 * F1 * H2 + H2 * F_out))
    bytes_accessed = 4 * (BT * C * S + BT * F_out) + param_bytes

    out = pl.pallas_call(
        _pse_kernel,
        out_shape=jax.ShapeDtypeStruct((BT_pad, F_out), jnp.float32),
        grid_spec=pltpu.PrefetchScalarGridSpec(
            num_scalar_prefetch=0,
            grid=(BT_pad // tile_bt,),
            in_specs=[pl.BlockSpec((tile_bt, C * S), lambda i: (i, 0))]
                     + [_full_spec(p) for p in ordered],
            out_specs=pl.BlockSpec((tile_bt, F_out), lambda i: (i, 0)),
        ),
        compiler_params=pltpu.CompilerParams(
            dimension_semantics=("parallel",),
            vmem_limit_bytes=vmem_limit),
        cost_estimate=pl.CostEstimate(flops=flops,
                                      transcendentals=BT * F1,
                                      bytes_accessed=bytes_accessed),
    )(xr, *ordered)

    return out[:BT].reshape(B, T, F_out)


# ------------------------- parameter construction ----------------------------
def make_params(key, input_dim, mlp1_dims, mlp2_dims, eps=1e-5):
    """Deterministic synthetic weights matching PixelSetEncoder's layer shapes.

    mlp1: Linear(C, mlp1_dims[0]) -> BN -> ReLU -> Linear(mlp1_dims[0], mlp1_dims[1])
    mlp2: Linear(2*mlp1_dims[-1], mlp2_dims[0]) -> BN -> ReLU
          -> Linear(mlp2_dims[0], mlp2_dims[1])
    """
    h1a, f1 = mlp1_dims
    h2a, f_out = mlp2_dims
    pool_dim = 2 * f1  # mean_std pooling

    ks = jax.random.split(key, 6)

    def lin(k, fan_in, fan_out):
        bound = 1.0 / np.sqrt(fan_in)
        kw, kb = jax.random.split(k)
        w = jax.random.uniform(kw, (fan_in, fan_out), jnp.float32, -bound, bound)
        b = jax.random.uniform(kb, (1, fan_out), jnp.float32, -bound, bound)
        return w, b

    def bn(k, dim):
        kg, kb, km, kv = jax.random.split(k, 4)
        gamma = 1.0 + 0.1 * jax.random.normal(kg, (1, dim), jnp.float32)
        beta = 0.1 * jax.random.normal(kb, (1, dim), jnp.float32)
        rmean = 0.1 * jax.random.normal(km, (1, dim), jnp.float32)
        rvar = 1.0 + 0.1 * jax.random.uniform(kv, (1, dim), jnp.float32)
        scale = gamma / jnp.sqrt(rvar + eps)
        shift = beta - rmean * scale
        return scale, shift

    w1, b1 = lin(ks[0], input_dim, h1a)
    s1, t1 = bn(ks[1], h1a)
    w2, b2 = lin(ks[2], h1a, f1)
    w3, b3 = lin(ks[3], pool_dim, h2a)
    s2, t2 = bn(ks[4], h2a)
    w4, b4 = lin(ks[5], h2a, f_out)

    return dict(w1=w1, b1=b1, s1=s1, t1=t1, w2=w2, b2=b2,
                w3=w3, b3=b3, s2=s2, t2=t2, w4=w4, b4=b4)


# --------------------------- pure-JAX reference -------------------------------
def reference(x, p):
    B, T, C, S = x.shape
    xr = jnp.transpose(x, (0, 1, 3, 2)).reshape(B * T * S, C)
    h = xr @ p["w1"] + p["b1"]
    h = jnp.maximum(h * p["s1"] + p["t1"], 0.0)
    h = h @ p["w2"] + p["b2"]
    f1 = h.shape[-1]
    h = h.reshape(B * T, S, f1)
    mean = h.mean(axis=1)
    std = jnp.sqrt(jnp.sum((h - mean[:, None, :]) ** 2, axis=1) / (S - 1))
    pooled = jnp.concatenate([mean, std], axis=1)
    y = pooled @ p["w3"] + p["b3"]
    y = jnp.maximum(y * p["s2"] + p["t2"], 0.0)
    y = y @ p["w4"] + p["b4"]
    return y.reshape(B, T, -1)


# ---------------------------------- main --------------------------------------
if __name__ == "__main__":
    # Small shapes consistent with the module: x [B, T, C, S]
    B, T, C, S = 2, 8, 4, 16
    mlp1_dims = (32, 64)     # mlp1: C -> 32 -> 64
    mlp2_dims = (64, 128)    # mlp2: 128 (mean_std) -> 64 -> 128

    key = jax.random.PRNGKey(0)
    kx, kp = jax.random.split(key)
    x = jax.random.normal(kx, (B, T, C, S), jnp.float32)
    params = make_params(kp, C, mlp1_dims, mlp2_dims)

    out = pixel_set_encoder(x, params)
    out = jax.block_until_ready(out)

    ref = reference(x, params)
    assert out.shape == (B, T, mlp2_dims[-1]), out.shape
    np.testing.assert_allclose(np.asarray(out), np.asarray(ref),
                               rtol=1e-4, atol=1e-4)
    print("KERNEL_OK")
</pallas_src>

<mosaic_0001>
module attributes {stable_mosaic.version = 11 : i64} {
  func.func @_pse_kernel(%arg0: i32, %arg1: memref<8x64xf32, #tpu.memory_space<vmem>>, %arg2: memref<32x4xf32, #tpu.memory_space<vmem>>, %arg3: memref<1x32xf32, #tpu.memory_space<vmem>>, %arg4: memref<32x64xf32, #tpu.memory_space<vmem>>, %arg5: memref<1x64xf32, #tpu.memory_space<vmem>>, %arg6: memref<64x64xf32, #tpu.memory_space<vmem>>, %arg7: memref<64x64xf32, #tpu.memory_space<vmem>>, %arg8: memref<1x64xf32, #tpu.memory_space<vmem>>, %arg9: memref<64x128xf32, #tpu.memory_space<vmem>>, %arg10: memref<1x128xf32, #tpu.memory_space<vmem>>, %arg11: memref<8x128xf32, #tpu.memory_space<vmem>>) attributes {dimension_semantics = [#tpu.dimension_semantics<parallel>], iteration_bounds = array<i64: 2>, scalar_prefetch = 0 : i64, scratch_operands = 0 : i64, tpu.core_type = #tpu.core_type<tc>, window_params = [{transform_indices = @transform_0, window_bounds = array<i64: 8, 64>}, {pipeline_mode = #tpu.pipeline_mode<synchronous>, transform_indices = @transform_1, window_bounds = array<i64: 32, 4>}, {pipeline_mode = #tpu.pipeline_mode<synchronous>, transform_indices = @transform_2, window_bounds = array<i64: 1, 32>}, {pipeline_mode = #tpu.pipeline_mode<synchronous>, transform_indices = @transform_3, window_bounds = array<i64: 32, 64>}, {pipeline_mode = #tpu.pipeline_mode<synchronous>, transform_indices = @transform_4, window_bounds = array<i64: 1, 64>}, {pipeline_mode = #tpu.pipeline_mode<synchronous>, transform_indices = @transform_5, window_bounds = array<i64: 64, 64>}, {pipeline_mode = #tpu.pipeline_mode<synchronous>, transform_indices = @transform_6, window_bounds = array<i64: 64, 64>}, {pipeline_mode = #tpu.pipeline_mode<synchronous>, transform_indices = @transform_7, window_bounds = array<i64: 1, 64>}, {pipeline_mode = #tpu.pipeline_mode<synchronous>, transform_indices = @transform_8, window_bounds = array<i64: 64, 128>}, {pipeline_mode = #tpu.pipeline_mode<synchronous>, transform_indices = @transform_9, window_bounds = array<i64: 1, 128>}, {transform_indices = @transform_10, window_bounds = array<i64: 8, 128>}]} {
    %c0 = arith.constant 0 : index
    %c0_0 = arith.constant 0 : index
    %0 = vector.load %arg1[%c0, %c0_0] : memref<8x64xf32, #tpu.memory_space<vmem>>, vector<8x64xf32>
    %c0_1 = arith.constant 0 : index
    %c0_2 = arith.constant 0 : index
    %1 = vector.load %arg2[%c0_1, %c0_2] : memref<32x4xf32, #tpu.memory_space<vmem>>, vector<32x4xf32>
    %2 = vector.extract_strided_slice %0 {offsets = [0, 0], sizes = [8, 16], strides = [1, 1]} : vector<8x64xf32> to vector<8x16xf32>
    %3 = vector.shape_cast %2 : vector<8x16xf32> to vector<8x1x16xf32>
    %4 = vector.extract_strided_slice %1 {offsets = [0, 0], sizes = [32, 1], strides = [1, 1]} : vector<32x4xf32> to vector<32x1xf32>
    %5 = vector.shape_cast %4 : vector<32x1xf32> to vector<1x32x1xf32>
    %6 = vector.broadcast %3 : vector<8x1x16xf32> to vector<8x32x16xf32>
    %7 = vector.broadcast %5 : vector<1x32x1xf32> to vector<8x32x16xf32>
    %8 = arith.mulf %6, %7 : vector<8x32x16xf32>
    %9 = vector.extract_strided_slice %0 {offsets = [0, 16], sizes = [8, 16], strides = [1, 1]} : vector<8x64xf32> to vector<8x16xf32>
    %10 = vector.shape_cast %9 : vector<8x16xf32> to vector<8x1x16xf32>
    %11 = vector.extract_strided_slice %1 {offsets = [0, 1], sizes = [32, 1], strides = [1, 1]} : vector<32x4xf32> to vector<32x1xf32>
    %12 = vector.shape_cast %11 : vector<32x1xf32> to vector<1x32x1xf32>
    %13 = vector.broadcast %10 : vector<8x1x16xf32> to vector<8x32x16xf32>
    %14 = vector.broadcast %12 : vector<1x32x1xf32> to vector<8x32x16xf32>
    %15 = arith.mulf %13, %14 : vector<8x32x16xf32>
    %16 = arith.addf %8, %15 : vector<8x32x16xf32>
    %17 = vector.extract_strided_slice %0 {offsets = [0, 32], sizes = [8, 16], strides = [1, 1]} : vector<8x64xf32> to vector<8x16xf32>
    %18 = vector.shape_cast %17 : vector<8x16xf32> to vector<8x1x16xf32>
    %19 = vector.extract_strided_slice %1 {offsets = [0, 2], sizes = [32, 1], strides = [1, 1]} : vector<32x4xf32> to vector<32x1xf32>
    %20 = vector.shape_cast %19 : vector<32x1xf32> to vector<1x32x1xf32>
    %21 = vector.broadcast %18 : vector<8x1x16xf32> to vector<8x32x16xf32>
    %22 = vector.broadcast %20 : vector<1x32x1xf32> to vector<8x32x16xf32>
    %23 = arith.mulf %21, %22 : vector<8x32x16xf32>
    %24 = arith.addf %16, %23 : vector<8x32x16xf32>
    %25 = vector.extract_strided_slice %0 {offsets = [0, 48], sizes = [8, 16], strides = [1, 1]} : vector<8x64xf32> to vector<8x16xf32>
    %26 = vector.shape_cast %25 : vector<8x16xf32> to vector<8x1x16xf32>
    %27 = vector.extract_strided_slice %1 {offsets = [0, 3], sizes = [32, 1], strides = [1, 1]} : vector<32x4xf32> to vector<32x1xf32>
    %28 = vector.shape_cast %27 : vector<32x1xf32> to vector<1x32x1xf32>
    %29 = vector.broadcast %26 : vector<8x1x16xf32> to vector<8x32x16xf32>
    %30 = vector.broadcast %28 : vector<1x32x1xf32> to vector<8x32x16xf32>
    %31 = arith.mulf %29, %30 : vector<8x32x16xf32>
    %32 = arith.addf %24, %31 : vector<8x32x16xf32>
    %33 = tpu.transpose %32, [0, 2, 1] : vector<8x32x16xf32> -> vector<8x16x32xf32>
    %34 = vector.shape_cast %33 : vector<8x16x32xf32> to vector<128x32xf32>
    %c0_3 = arith.constant 0 : index
    %c0_4 = arith.constant 0 : index
    %35 = vector.load %arg3[%c0_3, %c0_4] : memref<1x32xf32, #tpu.memory_space<vmem>>, vector<1x32xf32>
    %36 = vector.broadcast %35 : vector<1x32xf32> to vector<128x32xf32>
    %37 = arith.addf %34, %36 : vector<128x32xf32>
    %cst = arith.constant 0.000000e+00 : f32
    %38 = vector.broadcast %cst : f32 to vector<128x32xf32>
    %39 = arith.maximumf %37, %38 : vector<128x32xf32>
    %c0_5 = arith.constant 0 : index
    %c0_6 = arith.constant 0 : index
    %40 = vector.load %arg4[%c0_5, %c0_6] : memref<32x64xf32, #tpu.memory_space<vmem>>, vector<32x64xf32>
    %cst_7 = arith.constant dense<0.000000e+00> : vector<128x64xf32>
    %41 = tpu.matmul %39, %40, %cst_7 {dimension_numbers = #tpu.dot_dimension_numbers<[1], [0], [0], [1], [0, 0, 1, 1], [], []>} : vector<128x32xf32>, vector<32x64xf32>, vector<128x64xf32> -> vector<128x64xf32>
    %c0_8 = arith.constant 0 : index
    %c0_9 = arith.constant 0 : index
    %42 = vector.load %arg5[%c0_8, %c0_9] : memref<1x64xf32, #tpu.memory_space<vmem>>, vector<1x64xf32>
    %43 = vector.broadcast %42 : vector<1x64xf32> to vector<128x64xf32>
    %44 = arith.addf %41, %43 : vector<128x64xf32>
    %45 = vector.shape_cast %44 : vector<128x64xf32> to vector<8x16x64xf32>
    %cst_10 = arith.constant dense<0.000000e+00> : vector<8x64xf32>
    %46 = vector.multi_reduction <add>, %45, %cst_10 [1] : vector<8x16x64xf32> to vector<8x64xf32>
    %cst_11 = arith.constant 6.250000e-02 : f32
    %47 = vector.broadcast %cst_11 : f32 to vector<8x64xf32>
    %48 = arith.mulf %46, %47 : vector<8x64xf32>
    %49 = vector.shape_cast %48 : vector<8x64xf32> to vector<8x1x64xf32>
    %50 = vector.broadcast %49 : vector<8x1x64xf32> to vector<8x16x64xf32>
    %51 = arith.subf %45, %50 : vector<8x16x64xf32>
    %52 = arith.mulf %51, %51 : vector<8x16x64xf32>
    %cst_12 = arith.constant dense<0.000000e+00> : vector<8x64xf32>
    %53 = vector.multi_reduction <add>, %52, %cst_12 [1] : vector<8x16x64xf32> to vector<8x64xf32>
    %cst_13 = arith.constant 0.0666666701 : f32
    %54 = vector.broadcast %cst_13 : f32 to vector<8x64xf32>
    %55 = arith.mulf %53, %54 : vector<8x64xf32>
    %56 = math.sqrt %55 : vector<8x64xf32>
    %c0_14 = arith.constant 0 : index
    %c0_15 = arith.constant 0 : index
    %57 = vector.load %arg6[%c0_14, %c0_15] : memref<64x64xf32, #tpu.memory_space<vmem>>, vector<64x64xf32>
    %cst_16 = arith.constant dense<0.000000e+00> : vector<8x64xf32>
    %58 = tpu.matmul %48, %57, %cst_16 {dimension_numbers = #tpu.dot_dimension_numbers<[1], [0], [0], [1], [0, 0, 1, 1], [], []>} : vector<8x64xf32>, vector<64x64xf32>, vector<8x64xf32> -> vector<8x64xf32>
    %c0_17 = arith.constant 0 : index
    %c0_18 = arith.constant 0 : index
    %59 = vector.load %arg7[%c0_17, %c0_18] : memref<64x64xf32, #tpu.memory_space<vmem>>, vector<64x64xf32>
    %cst_19 = arith.constant dense<0.000000e+00> : vector<8x64xf32>
    %60 = tpu.matmul %56, %59, %cst_19 {dimension_numbers = #tpu.dot_dimension_numbers<[1], [0], [0], [1], [0, 0, 1, 1], [], []>} : vector<8x64xf32>, vector<64x64xf32>, vector<8x64xf32> -> vector<8x64xf32>
    %61 = arith.addf %58, %60 : vector<8x64xf32>
    %c0_20 = arith.constant 0 : index
    %c0_21 = arith.constant 0 : index
    %62 = vector.load %arg8[%c0_20, %c0_21] : memref<1x64xf32, #tpu.memory_space<vmem>>, vector<1x64xf32>
    %63 = vector.broadcast %62 : vector<1x64xf32> to vector<8x64xf32>
    %64 = arith.addf %61, %63 : vector<8x64xf32>
    %cst_22 = arith.constant 0.000000e+00 : f32
    %65 = vector.broadcast %cst_22 : f32 to vector<8x64xf32>
    %66 = arith.maximumf %64, %65 : vector<8x64xf32>
    %c0_23 = arith.constant 0 : index
    %c0_24 = arith.constant 0 : index
    %67 = vector.load %arg9[%c0_23, %c0_24] : memref<64x128xf32, #tpu.memory_space<vmem>>, vector<64x128xf32>
    %cst_25 = arith.constant dense<0.000000e+00> : vector<8x128xf32>
    %68 = tpu.matmul %66, %67, %cst_25 {dimension_numbers = #tpu.dot_dimension_numbers<[1], [0], [0], [1], [0, 0, 1, 1], [], []>} : vector<8x64xf32>, vector<64x128xf32>, vector<8x128xf32> -> vector<8x128xf32>
    %c0_26 = arith.constant 0 : index
    %c0_27 = arith.constant 0 : index
    %69 = vector.load %arg10[%c0_26, %c0_27] : memref<1x128xf32, #tpu.memory_space<vmem>>, vector<1x128xf32>
    %70 = vector.broadcast %69 : vector<1x128xf32> to vector<8x128xf32>
    %71 = arith.addf %68, %70 : vector<8x128xf32>
    %c0_28 = arith.constant 0 : index
    %c0_29 = arith.constant 0 : index
    %72 = vector.load %arg11[%c0_28, %c0_29] : memref<8x128xf32, #tpu.memory_space<vmem>>, vector<8x128xf32>
    tpu.vector_store %arg11[%c0_28, %c0_29], %71 {strides = array<i32>} : memref<8x128xf32, #tpu.memory_space<vmem>>, vector<8x128xf32>,
    return
  }
  func.func @transform_0(%arg0: i32) -> (i32, i32) {
    %c0_i32 = arith.constant 0 : i32
    %c0_i32_0 = arith.constant 0 : i32
    return %arg0, %c0_i32 : i32, i32
  }
  func.func @transform_1(%arg0: i32) -> (i32, i32) {
    %c0_i32 = arith.constant 0 : i32
    %c0_i32_0 = arith.constant 0 : i32
    %c0_i32_1 = arith.constant 0 : i32
    return %c0_i32, %c0_i32_0 : i32, i32
  }
  func.func @transform_2(%arg0: i32) -> (i32, i32) {
    %c0_i32 = arith.constant 0 : i32
    %c0_i32_0 = arith.constant 0 : i32
    %c0_i32_1 = arith.constant 0 : i32
    return %c0_i32, %c0_i32_0 : i32, i32
  }
  func.func @transform_3(%arg0: i32) -> (i32, i32) {
    %c0_i32 = arith.constant 0 : i32
    %c0_i32_0 = arith.constant 0 : i32
    %c0_i32_1 = arith.constant 0 : i32
    return %c0_i32, %c0_i32_0 : i32, i32
  }
  func.func @transform_4(%arg0: i32) -> (i32, i32) {
    %c0_i32 = arith.constant 0 : i32
    %c0_i32_0 = arith.constant 0 : i32
    %c0_i32_1 = arith.constant 0 : i32
    return %c0_i32, %c0_i32_0 : i32, i32
  }
  func.func @transform_5(%arg0: i32) -> (i32, i32) {
    %c0_i32 = arith.constant 0 : i32
    %c0_i32_0 = arith.constant 0 : i32
    %c0_i32_1 = arith.constant 0 : i32
    return %c0_i32, %c0_i32_0 : i32, i32
  }
  func.func @transform_6(%arg0: i32) -> (i32, i32) {
    %c0_i32 = arith.constant 0 : i32
    %c0_i32_0 = arith.constant 0 : i32
    %c0_i32_1 = arith.constant 0 : i32
    return %c0_i32, %c0_i32_0 : i32, i32
  }
  func.func @transform_7(%arg0: i32) -> (i32, i32) {
    %c0_i32 = arith.constant 0 : i32
    %c0_i32_0 = arith.constant 0 : i32
    %c0_i32_1 = arith.constant 0 : i32
    return %c0_i32, %c0_i32_0 : i32, i32
  }
  func.func @transform_8(%arg0: i32) -> (i32, i32) {
    %c0_i32 = arith.constant 0 : i32
    %c0_i32_0 = arith.constant 0 : i32
    %c0_i32_1 = arith.constant 0 : i32
    return %c0_i32, %c0_i32_0 : i32, i32
  }
  func.func @transform_9(%arg0: i32) -> (i32, i32) {
    %c0_i32 = arith.constant 0 : i32
    %c0_i32_0 = arith.constant 0 : i32
    %c0_i32_1 = arith.constant 0 : i32
    return %c0_i32, %c0_i32_0 : i32, i32
  }
  func.func @transform_10(%arg0: i32) -> (i32, i32) {
    %c0_i32 = arith.constant 0 : i32
    %c0_i32_0 = arith.constant 0 : i32
    return %arg0, %c0_i32 : i32, i32
  }
}

</mosaic_0001>

<bundles_post_ra>
// kernel: pixel_set_encoder.1
= control target key start
LH: loop header
LB: loop body
LE: loop exit
PB: predicated region body
PF: predicated region fallthrough
CT: control target
= control target key end

     0   :  { %15 = vsyncpa [#allocation3], 0  ;;  %s3561_s0 = inlined_call_operand.vmem [shape: f32[16,64], index: 0, kind: input, shape index: {}]   ;;  %s3562_s1 = inlined_call_operand.vmem [shape: f32[32,4], index: 1, kind: input, shape index: {}]   ;;  %s3563_s2 = inlined_call_operand.vmem [shape: f32[1,32], index: 2, kind: input, shape index: {}]   ;;  %s3564_s3 = inlined_call_operand.vmem [shape: f32[32,64], index: 3, kind: input, shape index: {}]   ;;  %s3565_s4 = inlined_call_operand.vmem [shape: f32[1,64], index: 4, kind: input, shape index: {}]   ;;  %s3566_s5 = inlined_call_operand.vmem [shape: f32[64,64], index: 5, kind: input, shape index: {}]   ;;  %s3567_s6 = inlined_call_operand.vmem [shape: f32[64,64], index: 6, kind: input, shape index: {}]   ;;  %s3568_s7 = inlined_call_operand.vmem [shape: f32[1,64], index: 7, kind: input, shape index: {}]   ;;  %s3569_s8 = inlined_call_operand.vmem [shape: f32[64,128], index: 8, kind: input, shape index: {}]   ;;  %s3570_s9 = inlined_call_operand.vmem [shape: f32[1,128], index: 9, kind: input, shape index: {}]   ;;  %s3571_s10 = inlined_call_operand.hbm [shape: f32[16,128], index: 10, kind: output, shape index: {}]  }
   0x1   :  { %17 = vsyncpa [#allocation3 + $0x1], 0  ;;  %s2665_s13 = smov 0   ;;  %s2667_s14 = smov 0  }
   0x2   :  { %s2669_s15 = smov 0   ;;  %s2671_s16 = smov 0  }
   0x3 LB: > { %s2686_s17 = sadd.s32 4294967295, %s2596_s16   ;;  %s2243_s18 = sadd.s32 4294967294, %s2596_s16   ;;  %s2596_s16 = sphi %s2671_s16, %s3577_s16   ;;  %s2592_s15 = sphi %s2669_s15, %s3576_s15   ;;  %s2588_s14 = sphi %s2667_s14, %s3575_s14   ;;  %s2584_s13 = sphi %s2665_s13, %s3574_s13  }
   0x4   : > { %s2690_s19 = sadd.s32 1, %s2596_s16   ;;  %s245_s20 = sadd.s32 1, %s2592_s15 }
   0x5   : > { %s242_s21 = ssub.s32 %s2596_s16, %s2690_s19  ;;  %p255_p0 = scmp.ne.s32.totalorder %s2592_s15, %s2588_s14 }
   0x6   : > { %p243_p1 = scmp.eq.s32.totalorder %s242_s21, 0  ;;  %p256_p2 = scmp.eq.s32.totalorder %s2686_s17, 1 }
   0x7   : > { %p261_p3 = scmp.ne.s32.totalorder %s2588_s14, %s2584_s13  ;;  %p262_p4 = scmp.eq.s32.totalorder %s2243_s18, 1 }
   0x8   : > { %s2701_s22 = scalar_select %p243_p1, %s2592_s15, %s245_s20  }
   0x9   : > { %p2703_p5 = por %p256_p2, %p255_p0  ;;  %p2707_p6 = por %p262_p4, %p261_p3 }
   0xa   : > { %p2246_p7 = scmp.ge.s32.totalorder %s2596_s16, 1  ;;  %p314_p8 = scmp.lt.s32.totalorder %s2596_s16, 3 }
   0xc   : > { %p315_p9 = pnand %p2246_p7, %p314_p8 }
   0xd   : > { %v356_v0 = vld [vmem:[%s3562_s1] sm:$0xff] (!%p315_p9)  ;;  %v365_v1 = vlaneseq (!%p315_p9)  ;;  %v2598_v2 = vmov (!%p315_p9), 2   ;;  %v2599_v3 = vmov (!%p315_p9), 1   ;;  %p351_p10 = scmp.lt.s32.totalorder (!%p315_p9), %s2686_s17, 1  ;;  %v2600_v4 = vmov (!%p315_p9), 1966171168  }
   0xe   : > { %318 = sbr.rel (%p315_p9) target bundleno = 1310 (0x51e), region = 60  ;;  %2507 = vset.pattern.permute.xlu1 (!%p315_p9), %v2598_v2  ;;  %2506 = vset.pattern.permute.xlu0 (!%p315_p9), %v2599_v3  ;;  %v363_v5 = vunpack.c.l.s4 (!%p315_p9), %v2600_v4  ;;  %v357_v7 = vld [vmem:[%s3562_s1 + $0x8] sm:$0xff] (!%p315_p9)  ;;  %v358_v8 = vld [vmem:[%s3562_s1 + $0x10] sm:$0xff] (!%p315_p9)  ;;  %v2601_v15 = vmov (!%p315_p9), 3   ;;  %v359_v18 = vld [vmem:[%s3562_s1 + $0x18] sm:$0xff] (!%p315_p9)  ;;  %v2602_v26 = vmov (!%p315_p9), 0  }
   0xf   : > { %711 = vperm.xlu1 (!%p315_p9), %2507, %v356_v0   ;;  %503 = vperm.xlu0 (!%p315_p9), %2506, %v356_v0   ;;  %v366_v6 = vshrl.u32 (!%p315_p9), %v365_v1, 7  ;;  %s2603_s27 = smov (!%p315_p9), 112   ;;  %s2604_s28 = smov (!%p315_p9), 96   ;;  %vm1432_vm0 = vcmask (!%p315_p9), 261120   ;;  %vm2607_vm1 = vmmov (!%p315_p9), 0   ;;  %vm1626_vm2 = vcmask (!%p315_p9), 523264  }
  0x10   : > { %v364_v9 = vunpack.c.0.s8 (!%p315_p9), %v363_v5  ;;  %vm1899_vm3 = vcmask (!%p315_p9), 1041409   ;;  %vm1901_vm4 = vcmask (!%p315_p9), 1042434   ;;  %vm1903_vm5 = vcmask (!%p315_p9), 1043459   ;;  %s348_s26 = sand.u32 (!%p315_p9), 1, %s2588_s14   ;;  %s2273_s30 = sshll.u32 (!%p315_p9), %s2686_s17, 7 }
  0x11   : > { %v2727_v13 = vsub.s32 (!%p315_p9), 0, %v366_v6  ;;  %vm1905_vm6 = vcmask (!%p315_p9), 1044484   ;;  %vm1907_vm11 = vcmask (!%p315_p9), 1045509   ;;  %s2171_s25 = scalar_lea.sflag (!%p315_p9), [#allocation3], %s348_s26 }
  0x12   : > { %v367_v10 = vsub.s32 (!%p315_p9), %v364_v9, %v366_v6 }
  0x13   : > { %2508 = vset.pattern.permute.xlu1 (!%p315_p9), %v2599_v3  ;;  %507 = vperm.xlu0 (!%p315_p9), %2506, %v357_v7  }
  0x14   : > { %511 = vperm.xlu1 (!%p315_p9), %2508, %v358_v8  }
  0x15   : > { %s352_s29 = scalar_select %p351_p10, %s2686_s17, 1 }
  0x16   : > { %s2609_s17 = smov [#allocation2]  }
  0x17   : > { %s2248_s12 = sshll.u32 %s352_s29, 3  ;;  %2509 = vset.pattern.permute.xlu0 %v2598_v2  ;;  %s2605_s29 = smov 80  }
  0x18   : > { %s354_s21 = scalar_lea.vmem %s3561_s0, %s2248_s12  ;;  %2510 = vset.pattern.permute.xlu1 %v2601_v15  ;;  %715 = vperm.xlu0 %2509, %v357_v7  }
  0x19   : > { %v355_v11 = vld [vmem:[%s354_s21] sm:$0xff]  ;;  %919 = vperm.xlu1 %2510, %v356_v0   ;;  %s3519_s21 = scalar_lea.hbm %s3571_s10, %s2273_s30 }
  0x1a   : > { %v361_v12 = vcombine.high %v355_v11, %v355_v11  ;;  %v368_v27 = vrot.slane %v355_v11, %v367_v10 }
  0x1c   : > { %v375_v14 = vrot.slane %v361_v12, %v367_v10  ;;  %719 = vperm.xlu0 %2509, %v358_v8   ;;  %v384_v28 = vrot.slane %v368_v27, %v367_v10  ;;  %v376_v30 = vcombine.high %v368_v27, %v368_v27 }
  0x1d   : > { %2511 = vset.pattern.permute.xlu1 %v2599_v3 }
  0x1e   : > { %v391_v16 = vrot.slane %v375_v14, %v367_v10  ;;  %v377_v17 = vcombine.high %v375_v14, %v375_v14  ;;  %515 = vperm.xlu1 %2511, %v359_v18   ;;  %v2748_v29 = vrot.slane %v384_v28, %v2727_v13  ;;  %v2757_v34 = vrot.slane %v376_v30, %v367_v10 }
  0x1f   : > { %v406_v52 = vcombine.high %v384_v28, %v384_v28 }
  0x20   : > { %v2734_v19 = vrot.slane %v391_v16, %v2727_v13  ;;  %v405_v20 = vrot.slane %v377_v17, %v367_v10  ;;  %v407_v21 = vcombine.high %v391_v16, %v391_v16  ;;  %723 = vperm.xlu0 %2509, %v359_v18   ;;  %v2769_v39 = vrot.slane %v2757_v34, %v2727_v13 }
  0x21   : > { %v2812_v56 = vrot.slane %v406_v52, %v2727_v13  ;;  %v408_v6 = vcombine.high %v2757_v34, %v2757_v34 }
  0x22   : > { %v2737_v22 = vrot.slane %v405_v20, %v2727_v13  ;;  %v2740_v23 = vrot.slane %v407_v21, %v2727_v13  ;;  %v409_v24 = vcombine.high %v405_v20, %v405_v20  ;;  %2512 = vset.pattern.permute.xlu1 %v2601_v15 }
  0x23   : > { %923 = vperm.xlu1 %2512, %v357_v7   ;;  %v2859_v9 = vrot.slane %v408_v6, %v2727_v13 }
  0x24   : > { %v2743_v25 = vrot.slane %v409_v24, %v2727_v13  ;;  %2513 = vset.pattern.permute.xlu0 %v2601_v15 }
  0x25   : > { %931 = vperm.xlu0 %2513, %v359_v18  }
  0x27   : > { %927 = vperm.xlu1 %2512, %v358_v8  }
  0x29   : > { %2515 = vset.pattern.permute.xlu0 %v2602_v26 }
  0x2a   : > { %462 = vperm.xlu0 %2515, %v358_v8  }
  0x2b   : > { %2514 = vset.pattern.permute.xlu1 %v2602_v26 }
  0x2c   : > { %452 = vperm.xlu1 %2514, %v356_v0  }
  0x30   : > { %457 = vperm.xlu1 %2514, %v357_v7  }
  0x34   : > { %467 = vperm.xlu1 %2514, %v359_v18  }
  0x8e   : > { %v2750_v31 = vpop.permute.xlu0 %503  ;;  %v2752_v32 = vpop.permute.xlu1 %711 }
  0x8f   : > { %v518_v33 = vmul.f32 %v2750_v31, %v2748_v29  ;;  %v726_v38 = vmul.f32 %v2752_v32, %v2748_v29  ;;  %v522_v41 = vmul.f32 %v2750_v31, %v2769_v39  ;;  %v730_v51 = vmul.f32 %v2752_v32, %v2769_v39 }
  0x90   : > { %v526_v58 = vmul.f32 %v2750_v31, %v2812_v56  ;;  %v734_v5 = vmul.f32 %v2752_v32, %v2812_v56  ;;  %v530_v11 = vmul.f32 %v2750_v31, %v2859_v9  ;;  %v738_v21 = vmul.f32 %v2752_v32, %v2859_v9 }
  0x91   : > { %582 = vrot.lane.b32.xlu1 %v518_v33, %s2603_s27  ;;  %v534_v28 = vmul.f32 %v2750_v31, %v2734_v19 }
  0x92   : > { %v2759_v35 = vpop.permute.xlu0 %507 }
  0x93   : > { %v2761_v36 = vpop.permute.xlu1 %511  ;;  %v519_v37 = vmul.f32 %v2759_v35, %v2748_v29  ;;  %v523_v48 = vmul.f32 %v2759_v35, %v2769_v39  ;;  %v527_v2 = vmul.f32 %v2759_v35, %v2812_v56  ;;  %v531_v18 = vmul.f32 %v2759_v35, %v2859_v9 }
  0x94   : > { %v520_v40 = vmul.f32 %v2761_v36, %v2748_v29  ;;  %v524_v55 = vmul.f32 %v2761_v36, %v2769_v39  ;;  %v528_v8 = vmul.f32 %v2761_v36, %v2812_v56  ;;  %v532_v24 = vmul.f32 %v2761_v36, %v2859_v9 }
  0x95   : > { %584 = vrot.lane.b32.xlu0 %v519_v37, %s2603_s27  ;;  %790 = vrot.lane.b32.xlu1 %v726_v38, %s2604_s28 }
  0x97   : > { %v2777_v42 = vpop.permute.xlu0 %715 }
  0x98   : > { %v2779_v43 = vpop.permute.xlu1 %919  ;;  %v727_v44 = vmul.f32 %v2777_v42, %v2748_v29  ;;  %v731_v61 = vmul.f32 %v2777_v42, %v2769_v39  ;;  %v735_v13 = vmul.f32 %v2777_v42, %v2812_v56  ;;  %v739_v33 = vmul.f32 %v2777_v42, %v2859_v9 }
  0x99   : > { %586 = vrot.lane.b32.xlu0 %v520_v40, %s2603_s27  ;;  %590 = vrot.lane.b32.xlu1 %v522_v41, %s2603_s27  ;;  %v934_v45 = vmul.f32 %v2779_v43, %v2748_v29  ;;  %v938_v63 = vmul.f32 %v2779_v43, %v2769_v39  ;;  %v942_v16 = vmul.f32 %v2779_v43, %v2812_v56 }
  0x9a   : > { %v946_v37 = vmul.f32 %v2779_v43, %v2859_v9  ;;  %v535_v40 = vmul.f32 %v2759_v35, %v2734_v19 }
  0x9b   : > { %v2795_v49 = vpop.permute.xlu0 %719 }
  0x9c   : > { %v728_v50 = vmul.f32 %v2795_v49, %v2748_v29  ;;  %v732_v3 = vmul.f32 %v2795_v49, %v2769_v39  ;;  %v736_v17 = vmul.f32 %v2795_v49, %v2812_v56  ;;  %v740_v38 = vmul.f32 %v2795_v49, %v2859_v9 }
  0x9d   : > { %792 = vrot.lane.b32.xlu0 %v727_v44, %s2604_s28  ;;  %998 = vrot.lane.b32.xlu1 %v934_v45, %s2605_s29  ;;  %v2789_v46 = vpop.permute.xlu1 %515  ;;  %v742_v44 = vmul.f32 %v2752_v32, %v2734_v19  ;;  %v536_v45 = vmul.f32 %v2761_v36, %v2734_v19 }
  0x9e   : > { %v521_v47 = vmul.f32 %v2789_v46, %v2748_v29  ;;  %v525_v0 = vmul.f32 %v2789_v46, %v2769_v39  ;;  %v529_v14 = vmul.f32 %v2789_v46, %v2812_v56  ;;  %v533_v34 = vmul.f32 %v2789_v46, %v2859_v9 }
  0x9f   : > { %v2814_v57 = vpop.permute.xlu0 %723 }
  0xa0   : > { %v729_v59 = vmul.f32 %v2814_v57, %v2748_v29  ;;  %v733_v10 = vmul.f32 %v2814_v57, %v2769_v39  ;;  %v737_v27 = vmul.f32 %v2814_v57, %v2812_v56 }
  0xa1   : > { %588 = vrot.lane.b32.xlu0 %v521_v47, %s2603_s27  ;;  %592 = vrot.lane.b32.xlu1 %v523_v48, %s2603_s27 }
  0xa2   : > { %v2803_v53 = vpop.permute.xlu1 %923 }
  0xa3   : > { %v935_v54 = vmul.f32 %v2803_v53, %v2748_v29  ;;  %v939_v7 = vmul.f32 %v2803_v53, %v2769_v39  ;;  %v943_v26 = vmul.f32 %v2803_v53, %v2812_v56  ;;  %v947_v47 = vmul.f32 %v2803_v53, %v2859_v9 }
  0xa4   : > { %v2838_v1 = vpop.permute.xlu0 %931 }
  0xa5   : > { %794 = vrot.lane.b32.xlu0 %v728_v50, %s2604_s28  ;;  %798 = vrot.lane.b32.xlu1 %v730_v51, %s2604_s28  ;;  %v937_v4 = vmul.f32 %v2838_v1, %v2748_v29  ;;  %v941_v20 = vmul.f32 %v2838_v1, %v2769_v39  ;;  %v945_v41 = vmul.f32 %v2838_v1, %v2812_v56 }
  0xa6   : > { %v2822_v60 = vpop.permute.xlu1 %927  ;;  %v741_v50 = vmul.f32 %v2814_v57, %v2859_v9  ;;  %v538_v51 = vmul.f32 %v2750_v31, %v2737_v22 }
  0xa7   : > { %v936_v62 = vmul.f32 %v2822_v60, %v2748_v29  ;;  %v940_v12 = vmul.f32 %v2822_v60, %v2769_v39  ;;  %v944_v30 = vmul.f32 %v2822_v60, %v2812_v56  ;;  %v948_v52 = vmul.f32 %v2822_v60, %v2859_v9 }
  0xa9   : > { %1000 = vrot.lane.b32.xlu0 %v935_v54, %s2605_s29  ;;  %594 = vrot.lane.b32.xlu1 %v524_v55, %s2603_s27  ;;  %v743_v54 = vmul.f32 %v2777_v42, %v2734_v19 }
  0xab   : > { %v2935_v48 = vpop.permute.xlu1 %452 }
  0xad   : > { %598 = vrot.lane.b32.xlu0 %v526_v58, %s2603_s27  ;;  %796 = vrot.lane.b32.xlu1 %v729_v59, %s2604_s28  ;;  %v537_v58 = vmul.f32 %v2789_v46, %v2734_v19  ;;  %v950_v59 = vmul.f32 %v2779_v43, %v2734_v19 }
  0xaf   : > { %v2947_v55 = vpop.permute.xlu1 %457 }
  0xb1   : > { %800 = vrot.lane.b32.xlu0 %v731_v61, %s2604_s28  ;;  %1002 = vrot.lane.b32.xlu1 %v936_v62, %s2605_s29  ;;  %v744_v62 = vmul.f32 %v2795_v49, %v2734_v19 }
  0xb3   : > { %v2957_v61 = vpop.permute.xlu1 %467 }
  0xb5   : > { %1006 = vrot.lane.b32.xlu0 %v938_v63, %s2605_s29  ;;  %596 = vrot.lane.b32.xlu1 %v525_v0, %s2603_s27  ;;  %v539_v63 = vmul.f32 %v2759_v35, %v2737_v22  ;;  %v2965_v0 = vpop.permute.xlu0 %462 }
  0xb9   : > { %600 = vrot.lane.b32.xlu0 %v527_v2, %s2603_s27  ;;  %802 = vrot.lane.b32.xlu1 %v732_v3, %s2604_s28  ;;  %v949_v3 = vmul.f32 %v2838_v1, %v2859_v9 }
  0xbd   : > { %806 = vrot.lane.b32.xlu0 %v734_v5, %s2604_s28  ;;  %1004 = vrot.lane.b32.xlu1 %v937_v4, %s2605_s29  ;;  %v746_v4 = vmul.f32 %v2752_v32, %v2737_v22  ;;  %v470_v5 = vmul.f32 %v2935_v48, %v2748_v29 }
  0xc1   : > { %1008 = vrot.lane.b32.xlu0 %v939_v7, %s2605_s29  ;;  %602 = vrot.lane.b32.xlu1 %v528_v8, %s2603_s27 }
  0xc5   : > { %804 = vrot.lane.b32.xlu1 %v733_v10, %s2604_s28  ;;  %606 = vrot.lane.b32.xlu0 %v530_v11, %s2603_s27  ;;  %v540_v10 = vmul.f32 %v2761_v36, %v2737_v22  ;;  %v951_v11 = vmul.f32 %v2803_v53, %v2734_v19 }
  0xc9   : > { %1010 = vrot.lane.b32.xlu1 %v940_v12, %s2605_s29  ;;  %808 = vrot.lane.b32.xlu0 %v735_v13, %s2604_s28  ;;  %v472_v13 = vmul.f32 %v2965_v0, %v2748_v29 }
  0xcd   : > { %604 = vrot.lane.b32.xlu1 %v529_v14, %s2603_s27  ;;  %1014 = vrot.lane.b32.xlu0 %v942_v16, %s2605_s29 }
  0xd1   : > { %810 = vrot.lane.b32.xlu1 %v736_v17, %s2604_s28  ;;  %608 = vrot.lane.b32.xlu0 %v531_v18, %s2603_s27  ;;  %v745_v17 = vmul.f32 %v2814_v57, %v2734_v19  ;;  %v542_v18 = vmul.f32 %v2750_v31, %v2740_v23 }
  0xd5   : > { %1012 = vrot.lane.b32.xlu1 %v941_v20, %s2605_s29  ;;  %814 = vrot.lane.b32.xlu0 %v738_v21, %s2604_s28 }
  0xd9   : > { %610 = vrot.lane.b32.xlu1 %v532_v24, %s2603_s27  ;;  %1016 = vrot.lane.b32.xlu0 %v943_v26, %s2605_s29  ;;  %v952_v26 = vmul.f32 %v2822_v60, %v2734_v19 }
  0xdd   : > { %812 = vrot.lane.b32.xlu1 %v737_v27, %s2604_s28  ;;  %614 = vrot.lane.b32.xlu0 %v534_v28, %s2603_s27  ;;  %v747_v27 = vmul.f32 %v2777_v42, %v2737_v22 }
  0xe1   : > { %1018 = vrot.lane.b32.xlu1 %v944_v30, %s2605_s29  ;;  %816 = vrot.lane.b32.xlu0 %v739_v33, %s2604_s28  ;;  %v473_v30 = vmul.f32 %v2957_v61, %v2748_v29 }
  0xe5   : > { %612 = vrot.lane.b32.xlu1 %v533_v34, %s2603_s27  ;;  %1022 = vrot.lane.b32.xlu0 %v946_v37, %s2605_s29  ;;  %v541_v37 = vmul.f32 %v2789_v46, %v2737_v22 }
  0xe9   : > { %818 = vrot.lane.b32.xlu1 %v740_v38, %s2604_s28  ;;  %616 = vrot.lane.b32.xlu0 %v535_v40, %s2603_s27  ;;  %v954_v38 = vmul.f32 %v2779_v43, %v2737_v22  ;;  %v474_v40 = vmul.f32 %v2935_v48, %v2769_v39 }
  0xed   : > { %1020 = vrot.lane.b32.xlu1 %v945_v41, %s2605_s29  ;;  %822 = vrot.lane.b32.xlu0 %v742_v44, %s2604_s28  ;;  %v471_v44 = vmul.f32 %v2947_v55, %v2748_v29  ;;  %v953_v29 = vmul.f32 %v2838_v1, %v2734_v19 }
  0xf1   : > { %618 = vrot.lane.b32.xlu1 %v536_v45, %s2603_s27  ;;  %1024 = vrot.lane.b32.xlu0 %v947_v47, %s2605_s29 }
  0xf5   : > { %820 = vrot.lane.b32.xlu1 %v741_v50, %s2604_s28  ;;  %622 = vrot.lane.b32.xlu0 %v538_v51, %s2603_s27  ;;  %v748_v51 = vmul.f32 %v2795_v49, %v2737_v22 }
  0xf9   : > { %1026 = vrot.lane.b32.xlu1 %v948_v52, %s2605_s29  ;;  %824 = vrot.lane.b32.xlu0 %v743_v54, %s2604_s28  ;;  %v543_v52 = vmul.f32 %v2759_v35, %v2740_v23 }
  0xfd   : > { %620 = vrot.lane.b32.xlu1 %v537_v58, %s2603_s27  ;;  %1030 = vrot.lane.b32.xlu0 %v950_v59, %s2605_s29 }
 0x101   : > { %826 = vrot.lane.b32.xlu1 %v744_v62, %s2604_s28  ;;  %624 = vrot.lane.b32.xlu0 %v539_v63, %s2603_s27 }
 0x103   : > { %v583_v2 = vpop.permute.xlu1 %582 }
 0x104   : > { %v678_v6 = vadd.f32 %v583_v2, %v470_v5  ;;  %v750_v2 = vmul.f32 %v2752_v32, %v2740_v23 }
 0x105   : > { %1028 = vrot.lane.b32.xlu1 %v949_v3, %s2605_s29  ;;  %830 = vrot.lane.b32.xlu0 %v746_v4, %s2604_s28 }
 0x107   : > { %v585_v7 = vpop.permute.xlu0 %584  ;;  %v791_v8 = vpop.permute.xlu1 %790 }
 0x108   : > { %v886_v12 = vadd.f32 %v791_v8, %v678_v6  ;;  %v679_v54 = vadd.f32 %v585_v7, %v471_v44  ;;  %v544_v6 = vmul.f32 %v2761_v36, %v2740_v23  ;;  %v955_v7 = vmul.f32 %v2803_v53, %v2737_v22 }
 0x109   : > { %626 = vrot.lane.b32.xlu1 %v540_v10, %s2603_s27  ;;  %1032 = vrot.lane.b32.xlu0 %v951_v11, %s2605_s29  ;;  %v475_v8 = vmul.f32 %v2947_v55, %v2769_v39  ;;  %v545_v44 = vmul.f32 %v2789_v46, %v2740_v23 }
 0x10b   : > { %v587_v14 = vpop.permute.xlu0 %586  ;;  %v591_v16 = vpop.permute.xlu1 %590 }
 0x10c   : > { %v680_v20 = vadd.f32 %v587_v14, %v472_v13  ;;  %v682_v45 = vadd.f32 %v591_v16, %v474_v40  ;;  %v749_v16 = vmul.f32 %v2814_v57, %v2737_v22 }
 0x10d   : > { %828 = vrot.lane.b32.xlu1 %v745_v17, %s2604_s28  ;;  %630 = vrot.lane.b32.xlu0 %v542_v18, %s2603_s27  ;;  %v546_v17 = vmul.f32 %v2750_v31, %v2743_v25  ;;  %v476_v31 = vmul.f32 %v2965_v0, %v2769_v39 }
 0x10f   : > { %v793_v21 = vpop.permute.xlu0 %792  ;;  %v999_v24 = vpop.permute.xlu1 %998 }
 0x110   : > { %v2993_v28 = vadd.f32 %v999_v24, %v886_v12  ;;  %v887_v59 = vadd.f32 %v793_v21, %v679_v54  ;;  %v477_v24 = vmul.f32 %v2957_v61, %v2769_v39  ;;  %v958_v39 = vmul.f32 %v2779_v43, %v2740_v23 }
 0x111   : > { %1034 = vrot.lane.b32.xlu1 %v952_v26, %s2605_s29  ;;  %832 = vrot.lane.b32.xlu0 %v747_v27, %s2604_s28  ;;  %v956_v27 = vmul.f32 %v2822_v60, %v2737_v22 }
 0x113   : > { %v589_v33 = vpop.permute.xlu0 %588  ;;  %v593_v34 = vpop.permute.xlu1 %592 }
 0x114   : > { %v681_v41 = vadd.f32 %v589_v33, %v473_v30  ;;  %v683_v11 = vadd.f32 %v593_v34, %v475_v8  ;;  %v751_v30 = vmul.f32 %v2777_v42, %v2740_v23 }
 0x115   : > { %628 = vrot.lane.b32.xlu1 %v541_v37, %s2603_s27  ;;  %1038 = vrot.lane.b32.xlu0 %v954_v38, %s2605_s29  ;;  %v479_v38 = vmul.f32 %v2947_v55, %v2812_v56 }
 0x117   : > { %v795_v47 = vpop.permute.xlu0 %794  ;;  %v799_v50 = vpop.permute.xlu1 %798 }
 0x118   : > { %v890_v58 = vadd.f32 %v799_v50, %v682_v45  ;;  %v888_v12 = vadd.f32 %v795_v47, %v680_v20  ;;  %v478_v45 = vmul.f32 %v2935_v48, %v2812_v56 }
 0x119   : > { %834 = vrot.lane.b32.xlu1 %v748_v51, %s2604_s28  ;;  %632 = vrot.lane.b32.xlu0 %v543_v52, %s2603_s27 }
 0x11b   : > { %v1001_v62 = vpop.permute.xlu0 %1000  ;;  %v595_v63 = vpop.permute.xlu1 %594 }
 0x11c   : > { %v3019_v3 = vadd.f32 %v1001_v62, %v887_v59  ;;  %v684_v37 = vadd.f32 %v595_v63, %v476_v31  ;;  %v547_v59 = vmul.f32 %v2759_v35, %v2743_v25  ;;  %v754_v35 = vmul.f32 %v2752_v32, %v2743_v25 }
 0x11d   : > { %1036 = vrot.lane.b32.xlu1 %v953_v29, %s2605_s29  ;;  %838 = vrot.lane.b32.xlu0 %v750_v2, %s2604_s28  ;;  %v480_v29 = vmul.f32 %v2965_v0, %v2812_v56  ;;  %v483_v31 = vmul.f32 %v2947_v55, %v2859_v9 }
 0x11f   : > { %v599_v4 = vpop.permute.xlu0 %598  ;;  %v797_v5 = vpop.permute.xlu1 %796 }
 0x120   : > { %v889_v10 = vadd.f32 %v797_v5, %v681_v41  ;;  %v686_v51 = vadd.f32 %v599_v4, %v478_v45  ;;  %v957_v5 = vmul.f32 %v2838_v1, %v2737_v22  ;;  %v961_v45 = vmul.f32 %v2838_v1, %v2740_v23 }
 0x121   : > { %634 = vrot.lane.b32.xlu1 %v544_v6, %s2603_s27  ;;  %1040 = vrot.lane.b32.xlu0 %v955_v7, %s2605_s29  ;;  %v482_v7 = vmul.f32 %v2935_v48, %v2859_v9 }
 0x123   : > { %v801_v13 = vpop.permute.xlu0 %800  ;;  %v1003_v14 = vpop.permute.xlu1 %1002 }
 0x124   : > { %v3035_v18 = vadd.f32 %v801_v13, %v683_v11  ;;  %v3037_v21 = vadd.f32 %v1003_v14, %v888_v12  ;;  %v548_v11 = vmul.f32 %v2761_v36, %v2743_v25  ;;  %v959_v12 = vmul.f32 %v2803_v53, %v2740_v23 }
 0x125   : > { %836 = vrot.lane.b32.xlu1 %v749_v16, %s2604_s28  ;;  %638 = vrot.lane.b32.xlu0 %v546_v17, %s2603_s27  ;;  %v755_v16 = vmul.f32 %v2777_v42, %v2743_v25  ;;  %v753_v17 = vmul.f32 %v2814_v57, %v2740_v23  ;;  %v481_v36 = vmul.f32 %v2957_v61, %v2812_v56 }
 0x126   : > { %v960_v42 = vmul.f32 %v2822_v60, %v2740_v23 }
 0x127   : > { %v1007_v20 = vpop.permute.xlu0 %1006  ;;  %v597_v26 = vpop.permute.xlu1 %596 }
 0x128   : > { %v3049_v33 = vadd.f32 %v1007_v20, %v890_v58  ;;  %v3051_v34 = vadd.f32 %v597_v26, %v477_v24  ;;  %v752_v58 = vmul.f32 %v2795_v49, %v2740_v23 }
 0x129   : > { %1042 = vrot.lane.b32.xlu1 %v956_v27, %s2605_s29  ;;  %840 = vrot.lane.b32.xlu0 %v751_v30, %s2604_s28  ;;  %v962_v27 = vmul.f32 %v2779_v43, %v2743_v25  ;;  %v549_v43 = vmul.f32 %v2789_v46, %v2743_v25 }
 0x12b   : > { %v601_v40 = vpop.permute.xlu0 %600  ;;  %v803_v41 = vpop.permute.xlu1 %802 }
 0x12c   : > { %v687_v47 = vadd.f32 %v601_v40, %v479_v38  ;;  %v3063_v50 = vadd.f32 %v803_v41, %v684_v37  ;;  %v756_v38 = vmul.f32 %v2795_v49, %v2743_v25 }
 0x12d   : > { %636 = vrot.lane.b32.xlu1 %v545_v44, %s2603_s27  ;;  %1046 = vrot.lane.b32.xlu0 %v958_v39, %s2605_s29  ;;  %v963_v39 = vmul.f32 %v2803_v53, %v2743_v25 }
 0x12f   : > { %v807_v52 = vpop.permute.xlu0 %806  ;;  %v1005_v54 = vpop.permute.xlu1 %1004 }
 0x130   : > { %v3071_v62 = vadd.f32 %v807_v52, %v686_v51  ;;  %v3073_v63 = vadd.f32 %v1005_v54, %v889_v10  ;;  %v757_v51 = vmul.f32 %v2814_v57, %v2743_v25  ;;  %v965_v54 = vmul.f32 %v2838_v1, %v2743_v25 }
 0x131   : > { %842 = vrot.lane.b32.xlu1 %v752_v58, %s2604_s28  ;;  %640 = vrot.lane.b32.xlu0 %v547_v59, %s2603_s27 }
 0x133   : > { %v3079_v2 = vpop.permute.xlu0 %1008  ;;  %v603_v4 = vpop.permute.xlu1 %602 }
 0x134   : > { %v3085_v6 = vadd.f32 %v603_v4, %v480_v29 }
 0x135   : > { %1044 = vrot.lane.b32.xlu1 %v957_v5, %s2605_s29  ;;  %846 = vrot.lane.b32.xlu0 %v754_v35, %s2604_s28 }
 0x137   : > { %v3091_v8 = vpop.permute.xlu1 %804  ;;  %v607_v10 = vpop.permute.xlu0 %606 }
 0x138   : > { %v3097_v13 = vadd.f32 %v607_v10, %v482_v7 }
 0x139   : > { %642 = vrot.lane.b32.xlu1 %v548_v11, %s2603_s27  ;;  %1048 = vrot.lane.b32.xlu0 %v959_v12, %s2605_s29 }
 0x13b   : > { %v1011_v32 = vpop.permute.xlu1 %1010  ;;  %v809_v14 = vpop.permute.xlu0 %808 }
 0x13c   : > { %v3105_v24 = vadd.f32 %v809_v14, %v687_v47  ;;  %v964_v47 = vmul.f32 %v2822_v60, %v2743_v25 }
 0x13d   : > { %848 = vrot.lane.b32.xlu1 %v755_v16, %s2604_s28  ;;  %844 = vrot.lane.b32.xlu0 %v753_v17, %s2604_s28 }
 0x13f   : > { %v605_v20 = vpop.permute.xlu1 %604  ;;  %v3111_v26 = vpop.permute.xlu0 %1014 }
 0x140   : > { %v3117_v30 = vadd.f32 %v605_v20, %v481_v36  ;;  %v1099_v36 = vadd.f32 %v3079_v2, %v3035_v18  ;;  %v1421_v18 = vld [vmem:[%s3564_s3] sm:$0xff]  ;;  %v1422_v2 = vld [vmem:[%s3564_s3 + $0x8] sm:$0xff] }
 0x141   : > { %1054 = vrot.lane.b32.xlu1 %v962_v27, %s2605_s29  ;;  %1050 = vrot.lane.b32.xlu0 %v960_v42, %s2605_s29  ;;  %v1100_v42 = vadd.f32 %v1011_v32, %v3063_v50  ;;  %v1423_v32 = vld [vmem:[%s3564_s3 + $0x10] sm:$0xff] }
 0x143   : > { %v3123_v37 = vpop.permute.xlu1 %810  ;;  %v609_v56 = vpop.permute.xlu0 %608 }
 0x144   : > { %v3129_v40 = vadd.f32 %v609_v56, %v483_v31  ;;  %v893_v31 = vadd.f32 %v3091_v8, %v3051_v34  ;;  %v1102_v8 = vadd.f32 %v3111_v26, %v3071_v62 }
 0x145   : > { %850 = vrot.lane.b32.xlu1 %v756_v38, %s2604_s28  ;;  %644 = vrot.lane.b32.xlu0 %v549_v43, %s2603_s27  ;;  %v1424_v43 = vld [vmem:[%s3564_s3 + $0x18] sm:$0xff]  ;;  %s2247_s27 = sshll.u32 %s348_s26, 3 }
 0x146   : > { %s350_s11 = scalar_lea.vmem [#allocation2], %s2247_s27  ;;  %s2538_s27 = sshll.u32 %s2609_s17, 4  ;;  %s2539_s27 = int_to_ptr.vmem [resolvable:$false] %s2538_s27 }
 0x147   : > { %v1013_v41 = vpop.permute.xlu1 %1012  ;;  %v3133_v44 = vpop.permute.xlu0 %814  ;;  %s2184_s12 = sshll.u32 %s350_s11, 4  ;;  %s3521_s12 = int_to_ptr.vmem [resolvable:$true] %s2184_s12 }
 0x148   : > { %v898_v26 = vadd.f32 %v3133_v44, %v3097_v13  ;;  %p2541_p0 = scmp.lt.s32.totalorder %s3521_s12, %s2539_s27 }
 0x149   : > { %1056 = vrot.lane.b32.xlu1 %v963_v39, %s2605_s29  ;;  %1052 = vrot.lane.b32.xlu0 %v961_v45, %s2605_s29  ;;  %v896_v45 = vadd.f32 %v3123_v37, %v3085_v6 }
 0x14b   : > { %v3141_v46 = vpop.permute.xlu1 %610  ;;  %v1017_v49 = vpop.permute.xlu0 %1016 }
 0x14c   : > { %v1103_v62 = vadd.f32 %v1017_v49, %v3105_v24 }
 0x14d   : > { %1058 = vrot.lane.b32.xlu1 %v964_v47, %s2605_s29  ;;  %852 = vrot.lane.b32.xlu0 %v757_v51, %s2604_s28  ;;  %s2534_s28 = scalar_lea.vmem %s3521_s12, 128 }
 0x14e   : > { %p2535_p11 = scmp.ne.s32.totalorder %s3521_s12, %s2534_s28 }
 0x14f   : > { %v3149_v53 = vpop.permute.xlu1 %812  ;;  %v3151_v52 = vpop.permute.xlu0 %614 }
 0x150   : > { %v897_v24 = vadd.f32 %v3149_v53, %v3117_v30  ;;  %v487_v30 = vmul.f32 %v2947_v55, %v2734_v19  ;;  %p2536_p12 = pnand %p2535_p11, %p2703_p5 }
 0x151   : > { %1060 = vrot.lane.b32.xlu0 %v965_v54, %s2605_s29  ;;  %s2540_s29 = scalar_lea.vmem %s2539_s27, 256 }
 0x152   : > { %p2537_p13 = pneg %p2536_p12  ;;  %p2542_p1 = scmp.lt.s32.totalorder %s2540_s29, %s2534_s28 }
 0x153   : > { %v1019_v58 = vpop.permute.xlu1 %1018  ;;  %v817_v59 = vpop.permute.xlu0 %816 }
 0x154   : > { %v1104_v54 = vadd.f32 %v1019_v58, %v896_v45  ;;  %p2543_p2 = por %p2542_p1, %p2541_p0 }
 0x156   : > { %p2544_p3 = pnand %p2543_p2, %p2537_p13 }
 0x157   : > { %v3156_v29 = vpop.permute.xlu1 %612  ;;  %v1023_v60 = vpop.permute.xlu0 %1022 }
 0x158   : > { %v1106_v51 = vadd.f32 %v1023_v60, %v898_v26 }
 0x15b   : > { %v3158_v4 = vpop.permute.xlu1 %818  ;;  %v3160_v57 = vpop.permute.xlu0 %616 }
 0x15f   : > { %v1021_v5 = vpop.permute.xlu1 %1020  ;;  %v3162_v35 = vpop.permute.xlu0 %822 }
 0x160   : > { %v1105_v58 = vadd.f32 %v1021_v5, %v897_v24 }
 0x163   : > { %v3164_v7 = vpop.permute.xlu1 %618  ;;  %v1025_v10 = vpop.permute.xlu0 %1024 }
 0x167   : > { %v3166_v11 = vpop.permute.xlu1 %820  ;;  %v3168_v1 = vpop.permute.xlu0 %622 }
 0x16b   : > { %v3170_v12 = vpop.permute.xlu1 %1026  ;;  %v3172_v14 = vpop.permute.xlu0 %824 }
 0x16f   : > { %v3174_v16 = vpop.permute.xlu1 %620  ;;  %v3176_v17 = vpop.permute.xlu0 %1030  ;;  %1158 = vxpose.xlu0.b32.start [1/4] (short) (narrow) %v3049_v33, 16  ;;  %v1101_v33 = vadd.f32 %v1013_v41, %v893_v31 }
 0x173   : > { %v3181_v20 = vpop.permute.xlu1 %826  ;;  %v3183_v27 = vpop.permute.xlu0 %624  ;;  %1159 = vxpose.xlu0.b32.cont [2/4] (short) (narrow) %v1099_v36, 16  ;;  %v484_v36 = vmul.f32 %v2965_v0, %v2859_v9 }
 0x175   : > { %v692_v37 = vadd.f32 %v3141_v46, %v484_v36 }
 0x176   : > { %1126 = vxpose.xlu1.b32.start [1/4] (short) (narrow) %v2993_v28, 16  ;;  %v2412_v28 = vpack.c.bf16 %v1422_v2, %v1421_v18 }
 0x177   : > { %v3189_v56 = vpop.permute.xlu1 %1028  ;;  %v3191_v38 = vpop.permute.xlu0 %830  ;;  %1160 = vxpose.xlu0.b32.cont [3/4] (short) (narrow) %v1100_v42, 16  ;;  %v899_v42 = vadd.f32 %v817_v59, %v3129_v40  ;;  %v485_v40 = vmul.f32 %v2957_v61, %v2859_v9  ;;  %v900_v59 = vadd.f32 %v3158_v4, %v692_v37  ;;  %v490_v4 = vmul.f32 %v2935_v48, %v2737_v22 }
 0x178   : > { %2413 = vmatprep.subr.bf16.mxu0 %v2412_v28 }
 0x179   : > { %2415 = vmatpush3.bf16.msra.mxu0 %v2412_v28  ;;  %v1107_v44 = vadd.f32 %v1025_v10, %v899_v42  ;;  %v693_v46 = vadd.f32 %v3156_v29, %v485_v40  ;;  %v1108_v10 = vadd.f32 %v3170_v12, %v900_v59  ;;  %v698_v29 = vadd.f32 %v3168_v1, %v490_v4 }
 0x17a   : > { %1127 = vxpose.xlu1.b32.cont [2/4] (short) (narrow) %v3019_v3, 16  ;;  %v2416_v3 = vpack.c.bf16 %v1424_v43, %v1423_v32 }
 0x17b   : > { %v3200_v50 = vpop.permute.xlu1 %626  ;;  %v1033_v34 = vpop.permute.xlu0 %1032  ;;  %1161 = vxpose.xlu0.b32.end [4/4] (short) (narrow) %v1101_v33, 16  ;;  %v901_v9 = vadd.f32 %v3166_v11, %v693_v46  ;;  %v491_v11 = vmul.f32 %v2947_v55, %v2737_v22  ;;  %v906_v28 = vadd.f32 %v3191_v38, %v698_v29 }
 0x17c   : > { %2417 = vmatprep.subr.bf16.mxu0 %v2416_v3 }
 0x17d   : > { %2419 = vmatpush3.bf16.msra.mxu0 %v2416_v3  ;;  %v699_v1 = vadd.f32 %v3183_v27, %v491_v11  ;;  %v492_v3 = vmul.f32 %v2965_v0, %v2737_v22  ;;  %v494_v27 = vmul.f32 %v2935_v48, %v2740_v23 }
 0x17e   : > { %1128 = vxpose.xlu1.b32.cont [3/4] (short) (narrow) %v3037_v21, 16 }
 0x17f   : > { %v3211_v41 = vpop.permute.xlu1 %828  ;;  %v3213_v39 = vpop.permute.xlu0 %630  ;;  %1190 = vxpose.xlu0.b32.start [1/4] (short) (narrow) %v1102_v8, 16  ;;  %v489_v8 = vmul.f32 %v2957_v61, %v2734_v19 }
 0x182   : > { %1129 = vxpose.xlu1.b32.end [4/4] (short) (narrow) %v3073_v63, 16  ;;  %v486_v63 = vmul.f32 %v2935_v48, %v2734_v19 }
 0x183   : > { %v1035_v47 = vpop.permute.xlu1 %1034  ;;  %v833_v21 = vpop.permute.xlu0 %832  ;;  %1191 = vxpose.xlu0.b32.cont [2/4] (short) (narrow) %v1103_v62, 16 }
 0x184   : > { %v694_v49 = vadd.f32 %v3151_v52, %v486_v63  ;;  %v695_v52 = vadd.f32 %v3160_v57, %v487_v30  ;;  %v1109_v57 = vadd.f32 %v3189_v56, %v901_v9  ;;  %v907_v62 = vadd.f32 %v833_v21, %v699_v1 }
 0x185   : > { %v702_v21 = vadd.f32 %v3213_v39, %v494_v27 }
 0x186   : > { %1222 = vxpose.xlu1.b32.start [1/4] (short) (narrow) %v1106_v51, 16  ;;  %v902_v53 = vadd.f32 %v3162_v35, %v694_v49  ;;  %v488_v35 = vmul.f32 %v2965_v0, %v2734_v19  ;;  %v903_v33 = vadd.f32 %v3172_v14, %v695_v52  ;;  %v495_v49 = vmul.f32 %v2947_v55, %v2740_v23 }
 0x187   : > { %v3228_v13 = vpop.permute.xlu1 %628  ;;  %v1039_v6 = vpop.permute.xlu0 %1038  ;;  %1192 = vxpose.xlu0.b32.cont [3/4] (short) (narrow) %v1104_v54, 16  ;;  %v498_v52 = vmul.f32 %v2935_v48, %v2743_v25 }
 0x188   : > { %v1110_v5 = vadd.f32 %v3176_v17, %v902_v53  ;;  %v696_v12 = vadd.f32 %v3164_v7, %v488_v35  ;;  %v1111_v17 = vadd.f32 %v1033_v34, %v903_v33  ;;  %v1114_v56 = vadd.f32 %v1039_v6, %v906_v28 }
 0x189   : > { %v697_v7 = vadd.f32 %v3174_v16, %v489_v8  ;;  %v500_v8 = vmul.f32 %v2965_v0, %v2743_v25 }
 0x18a   : > { %1223 = vxpose.xlu1.b32.cont [2/4] (short) (narrow) %v1107_v44, 16  ;;  %v904_v14 = vadd.f32 %v3181_v20, %v696_v12  ;;  %v700_v20 = vadd.f32 %v3200_v50, %v492_v3  ;;  %v493_v50 = vmul.f32 %v2957_v61, %v2737_v22  ;;  %v496_v22 = vmul.f32 %v2965_v0, %v2740_v23 }
 0x18b   : > { %v835_v60 = vpop.permute.xlu1 %834  ;;  %v633_v31 = vpop.permute.xlu0 %632  ;;  %1193 = vxpose.xlu0.b32.end [4/4] (short) (narrow) %v1105_v58, 16  ;;  %v905_v38 = vadd.f32 %v3211_v41, %v697_v7  ;;  %v499_v12 = vmul.f32 %v2947_v55, %v2743_v25  ;;  %v501_v55 = vmul.f32 %v2957_v61, %v2743_v25 }
 0x18c   : > { %v1112_v34 = vadd.f32 %v1035_v47, %v904_v14  ;;  %v908_v54 = vadd.f32 %v835_v60, %v700_v20  ;;  %v701_v44 = vadd.f32 %v3228_v13, %v493_v50  ;;  %v703_v59 = vadd.f32 %v633_v31, %v495_v49 }
 0x18e   : > { %1224 = vxpose.xlu1.b32.cont [3/4] (short) (narrow) %v1108_v10, 16 }
 0x18f   : > { %v1037_v18 = vpop.permute.xlu1 %1036  ;;  %v839_v2 = vpop.permute.xlu0 %838  ;;  %1254 = vxpose.xlu0.b32.start [1/4] (short) (narrow) %v1110_v5, 16 }
 0x190   : > { %v1113_v51 = vadd.f32 %v1037_v18, %v905_v38  ;;  %v910_v42 = vadd.f32 %v839_v2, %v702_v21 }
 0x192   : > { %1225 = vxpose.xlu1.b32.end [4/4] (short) (narrow) %v1109_v57, 16  ;;  %v497_v57 = vmul.f32 %v2957_v61, %v2740_v23 }
 0x193   : > { %v635_v32 = vpop.permute.xlu1 %634  ;;  %v1041_v43 = vpop.permute.xlu0 %1040  ;;  %1255 = vxpose.xlu0.b32.cont [2/4] (short) (narrow) %v1111_v17, 16 }
 0x194   : > { %v1115_v45 = vadd.f32 %v1041_v43, %v907_v62  ;;  %v704_v9 = vadd.f32 %v635_v32, %v496_v22 }
 0x196   : > { %1286 = vxpose.xlu1.b32.start [1/4] (short) (narrow) %v1114_v56, 16 }
 0x197   : > { %v837_v26 = vpop.permute.xlu1 %836  ;;  %1256 = vxpose.xlu0.b32.cont [3/4] (short) (narrow) %v1112_v34, 16  ;;  %v639_v19 = vpop.permute.xlu0 %638 }
 0x198   : > { %v909_v58 = vadd.f32 %v837_v26, %v701_v44  ;;  %v706_v4 = vadd.f32 %v639_v19, %v498_v52 }
 0x19a   : > { %1287 = vxpose.xlu1.b32.cont [2/4] (short) (narrow) %v1115_v45, 16 }
 0x19b   : > { %v1043_v16 = vpop.permute.xlu1 %1042  ;;  %1257 = vxpose.xlu0.b32.end [4/4] (short) (narrow) %v1113_v51, 16  ;;  %v841_v47 = vpop.permute.xlu0 %840  ;;  %v2249_v51 = vld [vmem:[%s3563_s2] ss:$0 sm:$0xff] }
 0x19c   : > { %v1116_v36 = vadd.f32 %v1043_v16, %v908_v54  ;;  %v911_v53 = vadd.f32 %v841_v47, %v703_v59 }
 0x19e   : > { %1288 = vxpose.xlu1.b32.cont [3/4] (short) (narrow) %v1116_v36, 16 }
 0x19f   : > { %v637_v41 = vpop.permute.xlu1 %636  ;;  %v1047_v24 = vpop.permute.xlu0 %1046 }
 0x1a0   : > { %v1118_v63 = vadd.f32 %v1047_v24, %v910_v42  ;;  %v705_v11 = vadd.f32 %v637_v41, %v497_v57 }
 0x1a2   : > { %1318 = vxpose.xlu0.b32.start [1/4] (short) (narrow) %v1118_v63, 16 }
 0x1a3   : > { %v843_v6 = vpop.permute.xlu1 %842  ;;  %v641_v37 = vpop.permute.xlu0 %640 }
 0x1a4   : > { %v912_v35 = vadd.f32 %v843_v6, %v704_v9  ;;  %v707_v28 = vadd.f32 %v641_v37, %v499_v12 }
 0x1a7   : > { %v1045_v40 = vpop.permute.xlu1 %1044  ;;  %v847_v39 = vpop.permute.xlu0 %846 }
 0x1a8   : > { %v1117_v30 = vadd.f32 %v1045_v40, %v909_v58  ;;  %v914_v33 = vadd.f32 %v847_v39, %v706_v4 }
 0x1aa   : > { %1289 = vxpose.xlu1.b32.end [4/4] (short) (narrow) %v1117_v30, 16 }
 0x1ab   : > { %v643_v60 = vpop.permute.xlu1 %642  ;;  %v1049_v46 = vpop.permute.xlu0 %1048 }
 0x1ac   : > { %v1119_v10 = vadd.f32 %v1049_v46, %v911_v53  ;;  %v708_v56 = vadd.f32 %v643_v60, %v500_v8 }
 0x1ae   : > { %1319 = vxpose.xlu0.b32.cont [2/4] (short) (narrow) %v1119_v10, 16 }
 0x1af   : > { %v849_v13 = vpop.permute.xlu1 %848  ;;  %v845_v5 = vpop.permute.xlu0 %844 }
 0x1b0   : > { %v915_v14 = vadd.f32 %v849_v13, %v707_v28  ;;  %v913_v32 = vadd.f32 %v845_v5, %v705_v11 }
 0x1b3   : > { %v1055_v31 = vpop.permute.xlu1 %1054  ;;  %v1051_v18 = vpop.permute.xlu0 %1050 }
 0x1b4   : > { %v1122_v2 = vadd.f32 %v1055_v31, %v914_v33  ;;  %v1120_v29 = vadd.f32 %v1051_v18, %v912_v35 }
 0x1b6   : > { %1320 = vxpose.xlu0.b32.cont [3/4] (short) (narrow) %v1120_v29, 16  ;;  %1350 = vxpose.xlu1.b32.start [1/4] (short) (narrow) %v1122_v2, 16 }
 0x1b7   : > { %v851_v48 = vpop.permute.xlu1 %850  ;;  %v645_v17 = vpop.permute.xlu0 %644 }
 0x1b8   : > { %v916_v23 = vadd.f32 %v851_v48, %v708_v56  ;;  %v709_v38 = vadd.f32 %v645_v17, %v501_v55  ;;  %v2606_v56 = vmov 0.0|0.0  }
 0x1b9   : > { %2420 = vmatprep.subr.bf16.mxu1 %v2606_v56  ;;  %2444 = vmatprep.subr.bf16.mxu0 %v2606_v56 }
 0x1bb   : > { %v1057_v43 = vpop.permute.xlu1 %1056  ;;  %v1053_v1 = vpop.permute.xlu0 %1052 }
 0x1bc   : > { %v1123_v7 = vadd.f32 %v1057_v43, %v915_v14  ;;  %v1121_v34 = vadd.f32 %v1053_v1, %v913_v32  ;;  %v1883_v32 = vld [vmem:[%s3567_s6] sm:$0xff]  ;;  %v1884_v43 = vld [vmem:[%s3567_s6 + $0x8] sm:$0xff]  ;;  %v1885_v1 = vld [vmem:[%s3567_s6 + $0x10] sm:$0xff] }
 0x1be   : > { %1321 = vxpose.xlu0.b32.end [4/4] (short) (narrow) %v1121_v34, 16  ;;  %1351 = vxpose.xlu1.b32.cont [2/4] (short) (narrow) %v1123_v7, 16  ;;  %v2421_v7 = vpack.c.bf16 %v1884_v43, %v1883_v32  ;;  %v1886_v34 = vld [vmem:[%s3567_s6 + $0x18] sm:$0xff] }
 0x1bf   : > { %v1059_v3 = vpop.permute.xlu1 %1058  ;;  %v853_v62 = vpop.permute.xlu0 %852  ;;  %v2424_v55 = vpack.c.bf16 %v1886_v34, %v1885_v1 }
 0x1c0   : > { %v1124_v26 = vadd.f32 %v1059_v3, %v916_v23  ;;  %v917_v19 = vadd.f32 %v853_v62, %v709_v38  ;;  %v2608_v23 = vmov 0.0   ;;  %2422 = vmatpush3.bf16.msra.mxu1 %v2421_v7  ;;  %v1887_v3 = vld [vmem:[%s3567_s6 + $0x20] sm:$0xff]  ;;  %v1888_v62 = vld [vmem:[%s3567_s6 + $0x28] sm:$0xff] }
 0x1c1   : > { %2371 = vmatprep.mubr.msk.f32.mxu1 %vm2607_vm1, %v2608_v23  ;;  %2423 = vmatprep.subr.bf16.mxu1 %v2606_v56  ;;  %v2427_v38 = vpack.c.bf16 %v1888_v62, %v1887_v3 }
 0x1c2   : > { %1352 = vxpose.xlu1.b32.cont [3/4] (short) (narrow) %v1124_v26, 16  ;;  %v1889_v26 = vld [vmem:[%s3567_s6 + $0x30] sm:$0xff] }
 0x1c3   : > { %v1061_v0 = vpop.permute.xlu0 %1060 }
 0x1c4   : > { %v1125_v20 = vadd.f32 %v1061_v0, %v917_v19  ;;  %2425 = vmatpush3.bf16.msra.mxu1 %v2424_v55  ;;  %v1890_v19 = vld [vmem:[%s3567_s6 + $0x38] sm:$0xff] }
 0x1c5   : > { %2426 = vmatprep.subr.bf16.mxu1 %v2606_v56  ;;  %v2430_v0 = vpack.c.bf16 %v1890_v19, %v1889_v26 }
 0x1c6   : > { %1353 = vxpose.xlu1.b32.end [4/4] (short) (narrow) %v1125_v20, 16  ;;  %v3340_v20 = vld [vmem:[%s3565_s4] ss:$0 sm:$0xff] }
 0x1c8   : > { %2428 = vmatpush3.bf16.msra.mxu1 %v2427_v38 }
 0x1c9   : > { %2429 = vmatprep.subr.bf16.mxu1 %v2606_v56 }
 0x1cc   : > { %2431 = vmatpush3.bf16.msra.mxu1 %v2430_v0 }
 0x1cd   : > { %2432 = vmatprep.subr.bf16.mxu1 %v2606_v56 }
 0x1e7   : > { %2516 = vset.pattern.permute.xlu0 %v2601_v15 }
 0x1ef   : > { %v1174_v45 = vpop.trf.xlu0 }
 0x1f0   : > { %v1391_v61 = vadd.f32 %v2249_v51, %v1174_v45 }
 0x1f2   : > { %v1407_v42 = vmax.f32 %v1391_v61, 0.0 }
 0x1f3   : > { %v1175_v16 = vpop.trf.xlu0 }
 0x1f4   : > { %v1392_v36 = vadd.f32 %v2249_v51, %v1175_v16 }
 0x1f6   : > { %v1142_v27 = vpop.trf.xlu1  ;;  %v1408_v24 = vmax.f32 %v1392_v36, 0.0 }
 0x1f7   : > { %v1389_v25 = vadd.f32 %v2249_v51, %v1142_v27 }
 0x1f9   : > { %v1405_v54 = vmax.f32 %v1389_v25, 0.0 }
 0x1fa   : > { %v1143_v47 = vpop.trf.xlu1 }
 0x1fb   : > { %v1390_v21 = vadd.f32 %v2249_v51, %v1143_v47  ;;  %2331 = vmatprep.mubr.msk.f32.mxu0 %vm1432_vm0, %v1405_v54 }
 0x1fd   : > { %v1406_v41 = vmax.f32 %v1390_v21, 0.0 }
 0x1ff   : > { %2332 = vmatmul.mubr.msk.f32.vlgmr.msra.gmra.mrb[0].mxu0 %vm1432_vm0, %v1406_v41  ;;  %v1206_v15 = vpop.trf.xlu0 }
 0x200   : > { %v1393_v63 = vadd.f32 %v2249_v51, %v1206_v15  ;;  %2334 = vmatprep.mubr.msk.f32.mxu0 %vm1432_vm0, %v1407_v42 }
 0x202   : > { %v1409_v50 = vmax.f32 %v1393_v63, 0.0 }
 0x203   : > { %2335 = vmatmul.mubr.msk.f32.gmra.mrb[2].mxu0 %vm1432_vm0, %v1408_v24  ;;  %v1207_v6 = vpop.trf.xlu0 }
 0x204   : > { %v1394_v37 = vadd.f32 %v2249_v51, %v1207_v6  ;;  %2337 = vmatprep.mubr.msk.f32.mxu0 %vm1432_vm0, %v1409_v50 }
 0x206   : > { %v1410_v44 = vmax.f32 %v1394_v37, 0.0  ;;  %v1238_v49 = vpop.trf.xlu1 }
 0x207   : > { %v1395_v58 = vadd.f32 %v2249_v51, %v1238_v49 }
 0x208   : > { %2338 = vmatmul.mubr.msk.f32.gmra.mrb[4].mxu0 %vm1432_vm0, %v1410_v44 }
 0x209   : > { %v1411_v40 = vmax.f32 %v1395_v58, 0.0 }
 0x20a   : > { %v1239_v39 = vpop.trf.xlu1 }
 0x20b   : > { %v1396_v59 = vadd.f32 %v2249_v51, %v1239_v39  ;;  %2340 = vmatprep.mubr.msk.f32.mxu0 %vm1432_vm0, %v1411_v40 }
 0x20d   : > { %v1412_v30 = vmax.f32 %v1396_v59, 0.0 }
 0x20f   : > { %2341 = vmatmul.mubr.msk.f32.gmra.mrb[6].mxu0 %vm1432_vm0, %v1412_v30  ;;  %v1270_v53 = vpop.trf.xlu0 }
 0x210   : > { %v1397_v60 = vadd.f32 %v2249_v51, %v1270_v53 }
 0x212   : > { %v1413_v46 = vmax.f32 %v1397_v60, 0.0 }
 0x213   : > { %v1271_v10 = vpop.trf.xlu0 }
 0x214   : > { %v1398_v22 = vadd.f32 %v2249_v51, %v1271_v10  ;;  %2343 = vmatprep.mubr.msk.f32.mxu0 %vm1432_vm0, %v1413_v46  ;;  %v2081_v46 = vld [vmem:[%s3569_s8] sm:$0xff]  ;;  %v2082_v10 = vld [vmem:[%s3569_s8 + $0x8] sm:$0xff] }
 0x216   : > { %v1414_v52 = vmax.f32 %v1398_v22, 0.0  ;;  %v2083_v22 = vld [vmem:[%s3569_s8 + $0x10] sm:$0xff] }
 0x218   : > { %2344 = vmatmul.mubr.msk.f32.gmra.mrb[8].mxu0 %vm1432_vm0, %v1414_v52 }
 0x21e   : > { %v1302_v13 = vpop.trf.xlu1 }
 0x21f   : > { %v1399_v5 = vadd.f32 %v2249_v51, %v1302_v13 }
 0x221   : > { %v1415_v9 = vmax.f32 %v1399_v5, 0.0  ;;  %v2445_v5 = vpack.c.bf16 %v2082_v10, %v2081_v46 }
 0x222   : > { %v1303_v4 = vpop.trf.xlu1 }
 0x223   : > { %v1400_v35 = vadd.f32 %v2249_v51, %v1303_v4  ;;  %2346 = vmatprep.mubr.msk.f32.mxu0 %vm1432_vm0, %v1415_v9  ;;  %v2084_v9 = vld [vmem:[%s3569_s8 + $0x18] sm:$0xff]  ;;  %2446 = vmatpush3.bf16.msra.mxu0 %v2445_v5 }
 0x224   : > { %2447 = vmatprep.subr.bf16.mxu0 %v2606_v56 }
 0x225   : > { %v1416_v33 = vmax.f32 %v1400_v35, 0.0 }
 0x227   : > { %2347 = vmatmul.mubr.msk.f32.gmra.mrb[10].mxu0 %vm1432_vm0, %v1416_v33 }
 0x232   : > { %v1334_v31 = vpop.trf.xlu0 }
 0x233   : > { %v1401_v18 = vadd.f32 %v2249_v51, %v1334_v31 }
 0x235   : > { %v1417_v2 = vmax.f32 %v1401_v18, 0.0 }
 0x236   : > { %v1335_v29 = vpop.trf.xlu0 }
 0x237   : > { %v1402_v57 = vadd.f32 %v2249_v51, %v1335_v29  ;;  %2349 = vmatprep.mubr.msk.f32.mxu0 %vm1432_vm0, %v1417_v2  ;;  %v2448_v29 = vpack.c.bf16 %v2084_v9, %v2083_v22 }
 0x239   : > { %v1418_v12 = vmax.f32 %v1402_v57, 0.0  ;;  %2449 = vmatpush3.bf16.msra.mxu0 %v2448_v29 }
 0x23a   : > { %v1366_v48 = vpop.trf.xlu1  ;;  %2450 = vmatprep.subr.bf16.mxu0 %v2606_v56 }
 0x23b   : > { %v1403_v17 = vadd.f32 %v2249_v51, %v1366_v48  ;;  %2350 = vmatmul.mubr.msk.f32.gmra.mrb[12].mxu0 %vm1432_vm0, %v1418_v12 }
 0x23d   : > { %v1419_v11 = vmax.f32 %v1403_v17, 0.0 }
 0x23e   : > { %v1367_v28 = vpop.trf.xlu1 }
 0x23f   : > { %v1404_v8 = vadd.f32 %v2249_v51, %v1367_v28  ;;  %2352 = vmatprep.mubr.msk.f32.mxu0 %vm1432_vm0, %v1419_v11 }
 0x241   : > { %v1420_v14 = vmax.f32 %v1404_v8, 0.0 }
 0x243   : > { %2353 = vmatmul.mubr.msk.f32.gmra.mrb[14].mxu0 %vm1432_vm0, %v1420_v14  ;;  %vm1909_vm0 = vcmask 1046534  }
 0x244   : > { %2409 = vmatprep.mubr.msk.f32.mxu0 %vm2607_vm1, %v2608_v23 }
 0x2d2   : > { %v2333_v45 = vpop.f32.mrb[0].mxu0 }
 0x2d3   : > { %v1553_v51 = vadd.f32 %v2333_v45, %v3340_v20  ;;  %v1547_v27 = vpop.f32.mrb[1].mxu0 }
 0x2d4   : > { %v1548_v25 = vadd.f32 %v3340_v20, %v1547_v27 }
 0x2d5   : > { %v1628_v61 = vsel %vm1626_vm2, %v1553_v51, 0.0 }
 0x2d6   : > { %v1627_v54 = vsel %vm1626_vm2, %v1548_v25, 0.0  ;;  %v2336_v16 = vpop.f32.mrb[2].mxu0 }
 0x2d7   : > { %v1629_v47 = vadd.f32 %v1628_v61, %v1627_v54  ;;  %v1563_v21 = vadd.f32 %v2336_v16, %v3340_v20  ;;  %v1557_v36 = vpop.f32.mrb[3].mxu0 }
 0x2d8   : > { %v1558_v42 = vadd.f32 %v3340_v20, %v1557_v36 }
 0x2d9   : > { %v1630_v41 = vrot.slane %v1629_v47, 4  ;;  %v1637_v24 = vsel %vm1626_vm2, %v1563_v21, 0.0 }
 0x2da   : > { %v1636_v15 = vsel %vm1626_vm2, %v1558_v42, 0.0 }
 0x2db   : > { %v1631_v63 = vadd.f32 %v1630_v41, %v1629_v47  ;;  %v1638_v50 = vadd.f32 %v1637_v24, %v1636_v15  ;;  %v2339_v6 = vpop.f32.mrb[4].mxu0 }
 0x2dc   : > { %v3351_v37 = vadd.f32 %v2339_v6, %v3340_v20  ;;  %v1567_v44 = vpop.f32.mrb[5].mxu0 }
 0x2dd   : > { %v1632_v49 = vrot.slane %v1631_v63, 2  ;;  %v1639_v58 = vrot.slane %v1638_v50, 4  ;;  %v3354_v40 = vadd.f32 %v3340_v20, %v1567_v44 }
 0x2de   : > { %v1646_v39 = vsel %vm1626_vm2, %v3351_v37, 0.0 }
 0x2df   : > { %v1633_v59 = vadd.f32 %v1632_v49, %v1631_v63  ;;  %v1640_v30 = vadd.f32 %v1639_v58, %v1638_v50  ;;  %v1645_v53 = vsel %vm1626_vm2, %v3354_v40, 0.0 }
 0x2e0   : > { %v1647_v60 = vadd.f32 %v1646_v39, %v1645_v53 }
 0x2e1   : > { %v1634_v52 = vrot.slane %v1633_v59, 1  ;;  %v1641_v13 = vrot.slane %v1640_v30, 2 }
 0x2e2   : > { %v1648_v4 = vrot.slane %v1647_v60, 4  ;;  %v2342_v35 = vpop.f32.mrb[6].mxu0 }
 0x2e3   : > { %v1635_v33 = vadd.f32 %v1634_v52, %v1633_v59  ;;  %v1642_v31 = vadd.f32 %v1641_v13, %v1640_v30  ;;  %v3373_v18 = vadd.f32 %v2342_v35, %v3340_v20  ;;  %v1577_v2 = vpop.f32.mrb[7].mxu0 }
 0x2e4   : > { %v1649_v57 = vadd.f32 %v1648_v4, %v1647_v60  ;;  %v3376_v12 = vadd.f32 %v3340_v20, %v1577_v2 }
 0x2e5   : > { %v1699_v48 = vmul.f32 0.0625, %v1635_v33  ;;  %v1643_v17 = vrot.slane %v1642_v31, 1  ;;  %v1655_v11 = vsel %vm1626_vm2, %v3373_v18, 0.0 }
 0x2e6   : > { %v1650_v28 = vrot.slane %v1649_v57, 2  ;;  %v1654_v8 = vsel %vm1626_vm2, %v3376_v12, 0.0 }
 0x2e7   : > { %v1707_v14 = vsub.f32 %v1548_v25, %v1699_v48  ;;  %v1708_v32 = vsub.f32 %v1553_v51, %v1699_v48  ;;  %v1644_v43 = vadd.f32 %v1643_v17, %v1642_v31  ;;  %v1656_v1 = vadd.f32 %v1655_v11, %v1654_v8 }
 0x2e8   : > { %v1651_v7 = vadd.f32 %v1650_v28, %v1649_v57 }
 0x2e9   : > { %v1723_v34 = vmul.f32 %v1707_v14, %v1707_v14  ;;  %v1724_v55 = vmul.f32 %v1708_v32, %v1708_v32  ;;  %v1700_v3 = vmul.f32 0.0625, %v1644_v43  ;;  %v1657_v62 = vrot.slane %v1656_v1, 4 }
 0x2ea   : > { %v1652_v38 = vrot.slane %v1651_v7, 1 }
 0x2eb   : > { %v1739_v26 = vsel %vm1626_vm2, %v1723_v34, 0.0  ;;  %v1740_v19 = vsel %vm1626_vm2, %v1724_v55, 0.0  ;;  %v1709_v0 = vsub.f32 %v1558_v42, %v1700_v3  ;;  %v1710_v45 = vsub.f32 %v1563_v21, %v1700_v3  ;;  %v2345_v27 = vpop.f32.mrb[8].mxu0 }
 0x2ec   : > { %v1741_v51 = vadd.f32 %v1740_v19, %v1739_v26  ;;  %v1993_v25 = vsel %vm1899_vm3, %v1700_v3, %v1699_v48  ;;  %v1653_v61 = vadd.f32 %v1652_v38, %v1651_v7  ;;  %v1658_v54 = vadd.f32 %v1657_v62, %v1656_v1  ;;  %v1587_v16 = vpop.f32.mrb[9].mxu0 }
 0x2ed   : > { %v1725_v47 = vmul.f32 %v1709_v0, %v1709_v0  ;;  %v1726_v36 = vmul.f32 %v1710_v45, %v1710_v45  ;;  %v3388_v41 = vadd.f32 %v2345_v27, %v3340_v20  ;;  %v3391_v24 = vadd.f32 %v3340_v20, %v1587_v16 }
 0x2ee   : > { %v1742_v15 = vrot.slane %v1741_v51, 4  ;;  %v1701_v63 = vmul.f32 0.0625, %v1653_v61  ;;  %v1659_v42 = vrot.slane %v1658_v54, 2 }
 0x2ef   : > { %v1748_v21 = vsel %vm1626_vm2, %v1725_v47, 0.0  ;;  %v1749_v50 = vsel %vm1626_vm2, %v1726_v36, 0.0  ;;  %v1664_v6 = vsel %vm1626_vm2, %v3388_v41, 0.0  ;;  %v1663_v44 = vsel %vm1626_vm2, %v3391_v24, 0.0 }
 0x2f0   : > { %v1743_v49 = vadd.f32 %v1742_v15, %v1741_v51  ;;  %v1750_v58 = vadd.f32 %v1749_v50, %v1748_v21  ;;  %v1711_v39 = vsub.f32 %v3354_v40, %v1701_v63  ;;  %v1712_v59 = vsub.f32 %v3351_v37, %v1701_v63 }
 0x2f1   : > { %v1994_v30 = vsel %vm1901_vm4, %v1701_v63, %v1993_v25  ;;  %v1660_v53 = vadd.f32 %v1659_v42, %v1658_v54  ;;  %v1665_v60 = vadd.f32 %v1664_v6, %v1663_v44 }
 0x2f2   : > { %v1744_v46 = vrot.slane %v1743_v49, 2  ;;  %v1751_v10 = vrot.slane %v1750_v58, 4  ;;  %v1727_v22 = vmul.f32 %v1711_v39, %v1711_v39  ;;  %v1728_v52 = vmul.f32 %v1712_v59, %v1712_v59 }
 0x2f3   : > { %v1661_v13 = vrot.slane %v1660_v53, 1  ;;  %v1666_v5 = vrot.slane %v1665_v60, 4 }
 0x2f4   : > { %v1745_v9 = vadd.f32 %v1744_v46, %v1743_v49  ;;  %v1752_v4 = vadd.f32 %v1751_v10, %v1750_v58  ;;  %v1757_v35 = vsel %vm1626_vm2, %v1727_v22, 0.0  ;;  %v1758_v33 = vsel %vm1626_vm2, %v1728_v52, 0.0 }
 0x2f5   : > { %v1759_v31 = vadd.f32 %v1758_v33, %v1757_v35  ;;  %v1662_v40 = vadd.f32 %v1661_v13, %v1660_v53  ;;  %v1667_v2 = vadd.f32 %v1666_v5, %v1665_v60 }
 0x2f6   : > { %v1746_v37 = vrot.slane %v1745_v9, 1  ;;  %v1753_v29 = vrot.slane %v1752_v4, 2 }
 0x2f7   : > { %v1760_v57 = vrot.slane %v1759_v31, 4  ;;  %v1702_v48 = vmul.f32 0.0625, %v1662_v40  ;;  %v1668_v17 = vrot.slane %v1667_v2, 2 }
 0x2f8   : > { %v1747_v11 = vadd.f32 %v1746_v37, %v1745_v9  ;;  %v1754_v28 = vadd.f32 %v1753_v29, %v1752_v4 }
 0x2f9   : > { %v1761_v8 = vadd.f32 %v1760_v57, %v1759_v31  ;;  %v1713_v14 = vsub.f32 %v3376_v12, %v1702_v48  ;;  %v1714_v32 = vsub.f32 %v3373_v18, %v1702_v48  ;;  %v1995_v43 = vsel %vm1903_vm5, %v1702_v48, %v1994_v30 }
 0x2fa   : > { %v1811_v1 = vmul.f32 0.06666667, %v1747_v11  ;;  %v1755_v7 = vrot.slane %v1754_v28, 1  ;;  %v1669_v34 = vadd.f32 %v1668_v17, %v1667_v2  ;;  %v2348_v55 = vpop.f32.mrb[10].mxu0 }
 0x2fb   : > { %v1762_v3 = vrot.slane %v1761_v8, 2  ;;  %v1729_v62 = vmul.f32 %v1713_v14, %v1713_v14  ;;  %v1730_v38 = vmul.f32 %v1714_v32, %v1714_v32  ;;  %v3408_v26 = vadd.f32 %v2348_v55, %v3340_v20  ;;  %v1597_v19 = vpop.f32.mrb[11].mxu0 }
 0x2fc   : > { %2518 = vrsqrt.f32 %v1811_v1  ;;  %v1756_v0 = vadd.f32 %v1755_v7, %v1754_v28  ;;  %v1670_v25 = vrot.slane %v1669_v34, 1  ;;  %v3415_v16 = vadd.f32 %v3340_v20, %v1597_v19 }
 0x2fd   : > { %v1763_v45 = vadd.f32 %v1762_v3, %v1761_v8  ;;  %v1766_v12 = vsel %vm1626_vm2, %v1729_v62, 0.0  ;;  %v1767_v18 = vsel %vm1626_vm2, %v1730_v38, 0.0  ;;  %v1673_v54 = vsel %vm1626_vm2, %v3408_v26, 0.0 }
 0x2fe   : > { %v1812_v27 = vmul.f32 0.06666667, %v1756_v0  ;;  %v1768_v51 = vadd.f32 %v1767_v18, %v1766_v12  ;;  %v1671_v15 = vadd.f32 %v1670_v25, %v1669_v34  ;;  %v1672_v63 = vsel %vm1626_vm2, %v3415_v16, 0.0 }
 0x2ff   : > { %v1764_v61 = vrot.slane %v1763_v45, 1  ;;  %v1674_v42 = vadd.f32 %v1673_v54, %v1672_v63  ;;  %vm1821_vm7 = vcmp.eq.f32.partialorder %v1811_v1, inf  ;;  %vm1823_vm8 = vcmp.eq.f32.partialorder %v1811_v1, 0.0 }
 0x300   : > { %2520 = vrsqrt.f32 %v1812_v27  ;;  %v1769_v36 = vrot.slane %v1768_v51, 4  ;;  %v1703_v6 = vmul.f32 0.0625, %v1671_v15  ;;  %v1824_v52 = vand.u32 2147483648, %v1811_v1 }
 0x301   : > { %v1765_v47 = vadd.f32 %v1764_v61, %v1763_v45  ;;  %v1675_v44 = vrot.slane %v1674_v42, 4  ;;  %vm1828_vm9 = vcmp.eq.f32.partialorder %v1812_v27, inf  ;;  %vm1830_vm10 = vcmp.eq.f32.partialorder %v1812_v27, 0.0 }
 0x302   : > { %v1770_v50 = vadd.f32 %v1769_v36, %v1768_v51  ;;  %v1715_v58 = vsub.f32 %v3391_v24, %v1703_v6  ;;  %v1716_v39 = vsub.f32 %v3388_v41, %v1703_v6  ;;  %v1996_v30 = vsel %vm1905_vm6, %v1703_v6, %v1995_v43 }
 0x303   : > { %v3419_v21 = vmul.f32 0.06666667, %v1765_v47  ;;  %v1676_v53 = vadd.f32 %v1675_v44, %v1674_v42  ;;  %v1831_v41 = vand.u32 2147483648, %v1812_v27 }
 0x304   : > { %v1771_v49 = vrot.slane %v1770_v50, 2  ;;  %v1731_v10 = vmul.f32 %v1715_v58, %v1715_v58  ;;  %v1732_v22 = vmul.f32 %v1716_v39, %v1716_v39 }
 0x305   : > { %2522 = vrsqrt.f32 %v3419_v21  ;;  %v1677_v13 = vrot.slane %v1676_v53, 2  ;;  %vm1835_vm12 = vcmp.eq.f32.partialorder %v3419_v21, inf  ;;  %v1838_v34 = vand.u32 2147483648, %v3419_v21 }
 0x306   : > { %v2519_v59 = vpop.eup %2518  ;;  %v1772_v46 = vadd.f32 %v1771_v49, %v1770_v50  ;;  %v1775_v4 = vsel %vm1626_vm2, %v1731_v10, 0.0  ;;  %v1776_v24 = vsel %vm1626_vm2, %v1732_v22, 0.0  ;;  %vm1837_vm13 = vcmp.eq.f32.partialorder %v3419_v21, 0.0 }
 0x307   : > { %v1820_v60 = vmul.f32 %v2519_v59, %v1811_v1  ;;  %v1777_v33 = vadd.f32 %v1776_v24, %v1775_v4  ;;  %v1678_v31 = vadd.f32 %v1677_v13, %v1676_v53 }
 0x308   : > { %v1773_v9 = vrot.slane %v1772_v46, 1 }
 0x309   : > { %v1822_v5 = vsel %vm1821_vm7, %v1811_v1, %v1820_v60  ;;  %v1778_v29 = vrot.slane %v1777_v33, 4  ;;  %v1679_v57 = vrot.slane %v1678_v31, 1 }
 0x30a   : > { %v2521_v35 = vpop.eup %2520  ;;  %v1774_v2 = vadd.f32 %v1773_v9, %v1772_v46  ;;  %v1825_v37 = vsel %vm1823_vm8, %v1824_v52, %v1822_v5 }
 0x30b   : > { %v1827_v40 = vmul.f32 %v2521_v35, %v1812_v27  ;;  %v1779_v28 = vadd.f32 %v1778_v29, %v1777_v33  ;;  %v1680_v8 = vadd.f32 %v1679_v57, %v1678_v31 }
 0x30c   : > { %v1814_v17 = vmul.f32 0.06666667, %v1774_v2 }
 0x30d   : > { %v1829_v48 = vsel %vm1828_vm9, %v1812_v27, %v1827_v40  ;;  %v1780_v55 = vrot.slane %v1779_v28, 2  ;;  %v1704_v3 = vmul.f32 0.0625, %v1680_v8 }
 0x30e   : > { %v1832_v11 = vsel %vm1830_vm10, %v1831_v41, %v1829_v48  ;;  %v2351_v14 = vpop.f32.mrb[12].mxu0  ;;  %2524 = vrsqrt.f32 %v1814_v17  ;;  %vm1842_vm14 = vcmp.eq.f32.partialorder %v1814_v17, inf  ;;  %v1845_v46 = vand.u32 2147483648, %v1814_v17 }
 0x30f   : > { %v2523_v32 = vpop.eup %2522  ;;  %v1900_v43 = vsel %vm1899_vm3, %v1832_v11, %v1825_v37  ;;  %v1613_v1 = vadd.f32 %v2351_v14, %v3340_v20  ;;  %v1607_v7 = vpop.f32.mrb[13].mxu0  ;;  %v1781_v0 = vadd.f32 %v1780_v55, %v1779_v28  ;;  %v1717_v45 = vsub.f32 %v3415_v16, %v1704_v3 }
 0x310   : > { %v1608_v62 = vadd.f32 %v3340_v20, %v1607_v7  ;;  %v1834_v38 = vmul.f32 %v2523_v32, %v3419_v21  ;;  %v1718_v12 = vsub.f32 %v3408_v26, %v1704_v3  ;;  %v1997_v25 = vsel %vm1907_vm11, %v1704_v3, %v1996_v30 }
 0x311   : > { %v1682_v19 = vsel %vm1626_vm2, %v1613_v1, 0.0  ;;  %v1782_v61 = vrot.slane %v1781_v0, 1  ;;  %v1733_v54 = vmul.f32 %v1717_v45, %v1717_v45  ;;  %vm1844_vm15 = vcmp.eq.f32.partialorder %v1814_v17, 0.0 }
 0x312   : > { %v1681_v18 = vsel %vm1626_vm2, %v1608_v62, 0.0  ;;  %v1836_v51 = vsel %vm1835_vm12, %v3419_v21, %v1834_v38  ;;  %v1734_v47 = vmul.f32 %v1718_v12, %v1718_v12 }
 0x313   : > { %v1683_v27 = vadd.f32 %v1682_v19, %v1681_v18  ;;  %v1839_v36 = vsel %vm1837_vm13, %v1838_v34, %v1836_v51  ;;  %v1783_v42 = vadd.f32 %v1782_v61, %v1781_v0  ;;  %v1784_v16 = vsel %vm1626_vm2, %v1733_v54, 0.0 }
 0x314   : > { %v1902_v63 = vsel %vm1901_vm4, %v1839_v36, %v1900_v43  ;;  %v1785_v26 = vsel %vm1626_vm2, %v1734_v47, 0.0 }
 0x315   : > { %v1684_v15 = vrot.slane %v1683_v27, 4  ;;  %v1786_v6 = vadd.f32 %v1785_v26, %v1784_v16  ;;  %v1815_v58 = vmul.f32 0.06666667, %v1783_v42 }
 0x316   : > { %v2354_v50 = vpop.f32.mrb[14].mxu0 }
 0x317   : > { %v1685_v44 = vadd.f32 %v1684_v15, %v1683_v27  ;;  %v1623_v49 = vadd.f32 %v2354_v50, %v3340_v20  ;;  %v1617_v21 = vpop.f32.mrb[15].mxu0  ;;  %v1787_v30 = vrot.slane %v1786_v6, 4  ;;  %2526 = vrsqrt.f32 %v1815_v58 }
 0x318   : > { %v1618_v39 = vadd.f32 %v3340_v20, %v1617_v21  ;;  %v2525_v59 = vpop.eup %2524  ;;  %vm1849_vm3 = vcmp.eq.f32.partialorder %v1815_v58, inf  ;;  %v1852_v55 = vand.u32 2147483648, %v1815_v58  ;;  %vm1851_vm4 = vcmp.eq.f32.partialorder %v1815_v58, 0.0 }
 0x319   : > { %v1686_v53 = vrot.slane %v1685_v44, 2  ;;  %v1691_v60 = vsel %vm1626_vm2, %v1623_v49, 0.0  ;;  %v1841_v22 = vmul.f32 %v2525_v59, %v1814_v17  ;;  %v1788_v52 = vadd.f32 %v1787_v30, %v1786_v6 }
 0x31a   : > { %v1690_v10 = vsel %vm1626_vm2, %v1618_v39, 0.0 }
 0x31b   : > { %v1687_v13 = vadd.f32 %v1686_v53, %v1685_v44  ;;  %v1692_v5 = vadd.f32 %v1691_v60, %v1690_v10  ;;  %v1843_v9 = vsel %vm1842_vm14, %v1814_v17, %v1841_v22  ;;  %v1789_v4 = vrot.slane %v1788_v52, 2 }
 0x31c   : > { %v1846_v20 = vsel %vm1844_vm15, %v1845_v46, %v1843_v9 }
 0x31d   : > { %v1688_v24 = vrot.slane %v1687_v13, 1  ;;  %v1693_v35 = vrot.slane %v1692_v5, 4  ;;  %v1904_v41 = vsel %vm1903_vm5, %v1846_v20, %v1902_v63  ;;  %v1790_v33 = vadd.f32 %v1789_v4, %v1788_v52 }
 0x31e   : > { %vm1911_vm5 = vcmask 1047559  }
 0x31f   : > { %v1689_v31 = vadd.f32 %v1688_v24, %v1687_v13  ;;  %v1694_v40 = vadd.f32 %v1693_v35, %v1692_v5  ;;  %v1791_v2 = vrot.slane %v1790_v33, 1 }
 0x321   : > { %v1705_v37 = vmul.f32 0.0625, %v1689_v31  ;;  %v1695_v29 = vrot.slane %v1694_v40, 2  ;;  %v1792_v57 = vadd.f32 %v1791_v2, %v1790_v33  ;;  %v2527_v8 = vpop.eup %2526  ;;  %v1876_v33 = vld [vmem:[%s3566_s5 + $0x8] sm:$0xff] }
 0x322   : > { %v1848_v34 = vmul.f32 %v2527_v8, %v1815_v58  ;;  %v1879_v8 = vld [vmem:[%s3566_s5 + $0x20] sm:$0xff] }
 0x323   : > { %v1719_v48 = vsub.f32 %v1608_v62, %v1705_v37  ;;  %v1720_v11 = vsub.f32 %v1613_v1, %v1705_v37  ;;  %v1696_v28 = vadd.f32 %v1695_v29, %v1694_v40  ;;  %v1998_v17 = vsel %vm1909_vm0, %v1705_v37, %v1997_v25 }
 0x324   : > { %v1816_v14 = vmul.f32 0.06666667, %v1792_v57  ;;  %v1850_v62 = vsel %vm1849_vm3, %v1815_v58, %v1848_v34  ;;  %v1877_v57 = vld [vmem:[%s3566_s5 + $0x10] sm:$0xff]  ;;  %v2086_v34 = vld [vmem:[%s3569_s8 + $0x28] sm:$0xff] }
 0x325   : > { %v1735_v32 = vmul.f32 %v1719_v48, %v1719_v48  ;;  %v1736_v43 = vmul.f32 %v1720_v11, %v1720_v11  ;;  %v1697_v7 = vrot.slane %v1696_v28, 1  ;;  %v1853_v45 = vsel %vm1851_vm4, %v1852_v55, %v1850_v62  ;;  %v1878_v48 = vld [vmem:[%s3566_s5 + $0x18] sm:$0xff]  ;;  %v2087_v55 = vld [vmem:[%s3569_s8 + $0x30] sm:$0xff] }
 0x326   : > { %2528 = vrsqrt.f32 %v1816_v14  ;;  %v1906_v18 = vsel %vm1905_vm6, %v1853_v45, %v1904_v41  ;;  %vm1856_vm6 = vcmp.eq.f32.partialorder %v1816_v14, inf  ;;  %v1859_v21 = vand.u32 2147483648, %v1816_v14  ;;  %v1875_v41 = vld [vmem:[%s3566_s5] sm:$0xff] }
 0x327   : > { %v1793_v3 = vsel %vm1626_vm2, %v1735_v32, 0.0  ;;  %v1794_v38 = vsel %vm1626_vm2, %v1736_v43, 0.0  ;;  %v1698_v19 = vadd.f32 %v1697_v7, %v1696_v28  ;;  %vm1858_vm7 = vcmp.eq.f32.partialorder %v1816_v14, 0.0  ;;  %v1881_v32 = vld [vmem:[%s3566_s5 + $0x30] sm:$0xff]  ;;  %v2085_v7 = vld [vmem:[%s3569_s8 + $0x20] sm:$0xff] }
 0x328   : > { %v1795_v0 = vadd.f32 %v1794_v38, %v1793_v3  ;;  %v2433_v37 = vpack.c.bf16 %v1876_v33, %v1875_v41  ;;  %v2436_v28 = vpack.c.bf16 %v1878_v48, %v1877_v57  ;;  %v2451_v3 = vpack.c.bf16 %v2086_v34, %v2085_v7  ;;  %v2088_v38 = vld [vmem:[%s3569_s8 + $0x38] sm:$0xff]  ;;  %v2269_v45 = vld [vmem:[%s3568_s7] ss:$0 sm:$0xff] }
 0x329   : > { %v1706_v1 = vmul.f32 0.0625, %v1698_v19  ;;  %v2454_v19 = vpack.c.bf16 %v2088_v38, %v2087_v55 }
 0x32a   : > { %v1796_v12 = vrot.slane %v1795_v0, 4  ;;  %2452 = vmatpush3.bf16.msra.mxu0 %v2451_v3 }
 0x32b   : > { %v1721_v27 = vsub.f32 %v1618_v39, %v1706_v1  ;;  %v1722_v51 = vsub.f32 %v1623_v49, %v1706_v1  ;;  %v3455_v25 = vsel %vm1911_vm5, %v1706_v1, %v1998_v17  ;;  %v1880_v17 = vld [vmem:[%s3566_s5 + $0x28] sm:$0xff]  ;;  %2453 = vmatprep.subr.bf16.mxu0 %v2606_v56 }
 0x32c   : > { %v1797_v61 = vadd.f32 %v1796_v12, %v1795_v0 }
 0x32d   : > { %v1737_v54 = vmul.f32 %v1721_v27, %v1721_v27  ;;  %v1738_v47 = vmul.f32 %v1722_v51, %v1722_v51 }
 0x32e   : > { %v1798_v36 = vrot.slane %v1797_v61, 2  ;;  %2455 = vmatpush3.bf16.msra.mxu0 %v2454_v19 }
 0x32f   : > { %v1802_v15 = vsel %vm1626_vm2, %v1737_v54, 0.0  ;;  %v1803_v63 = vsel %vm1626_vm2, %v1738_v47, 0.0 }
 0x330   : > { %v1799_v42 = vadd.f32 %v1798_v36, %v1797_v61  ;;  %v1804_v16 = vadd.f32 %v1803_v63, %v1802_v15  ;;  %v2529_v26 = vpop.eup %2528 }
 0x331   : > { %v1855_v44 = vmul.f32 %v2529_v26, %v1816_v14 }
 0x332   : > { %v1800_v50 = vrot.slane %v1799_v42, 1  ;;  %v1805_v6 = vrot.slane %v1804_v16, 4 }
 0x333   : > { %v1857_v39 = vsel %vm1856_vm6, %v1816_v14, %v1855_v44  ;;  %v2439_v14 = vpack.c.bf16 %v1880_v17, %v1879_v8 }
 0x334   : > { %v1801_v49 = vadd.f32 %v1800_v50, %v1799_v42  ;;  %v1806_v58 = vadd.f32 %v1805_v6, %v1804_v16  ;;  %v1860_v59 = vsel %vm1858_vm7, %v1859_v21, %v1857_v39 }
 0x335   : > { %v1908_v60 = vsel %vm1907_vm11, %v1860_v59, %v1906_v18 }
 0x336   : > { %v1817_v30 = vmul.f32 0.06666667, %v1801_v49  ;;  %v1807_v53 = vrot.slane %v1806_v58, 2 }
 0x338   : > { %v1808_v46 = vadd.f32 %v1807_v53, %v1806_v58  ;;  %2530 = vrsqrt.f32 %v1817_v30  ;;  %vm1863_vm8 = vcmp.eq.f32.partialorder %v1817_v30, inf  ;;  %v1866_v9 = vand.u32 2147483648, %v1817_v30 }
 0x339   : > { %vm1865_vm9 = vcmp.eq.f32.partialorder %v1817_v30, 0.0 }
 0x33a   : > { %v1809_v10 = vrot.slane %v1808_v46, 1 }
 0x33c   : > { %v1810_v22 = vadd.f32 %v1809_v10, %v1808_v46 }
 0x33e   : > { %v1818_v52 = vmul.f32 0.06666667, %v1810_v22 }
 0x340   : > { %2532 = vrsqrt.f32 %v1818_v52  ;;  %vm1870_vm10 = vcmp.eq.f32.partialorder %v1818_v52, inf  ;;  %v1873_v40 = vand.u32 2147483648, %v1818_v52  ;;  %vm1872_vm11 = vcmp.eq.f32.partialorder %v1818_v52, 0.0 }
 0x342   : > { %v2531_v13 = vpop.eup %2530 }
 0x343   : > { %v1862_v5 = vmul.f32 %v2531_v13, %v1817_v30 }
 0x345   : > { %v1864_v4 = vsel %vm1863_vm8, %v1817_v30, %v1862_v5 }
 0x346   : > { %v1867_v24 = vsel %vm1865_vm9, %v1866_v9, %v1864_v4 }
 0x347   : > { %v1910_v35 = vsel %vm1909_vm0, %v1867_v24, %v1908_v60 }
 0x34a   : > { %v2533_v20 = vpop.eup %2532 }
 0x34b   : > { %v1869_v31 = vmul.f32 %v2533_v20, %v1818_v52 }
 0x34d   : > { %v1871_v2 = vsel %vm1870_vm10, %v1818_v52, %v1869_v31 }
 0x34e   : > { %v1874_v29 = vsel %vm1872_vm11, %v1873_v40, %v1871_v2 }
 0x34f   : > { %v1912_v11 = vsel %vm1911_vm5, %v1874_v29, %v1910_v35 }
 0x350   : > { %2372 = vmatmul.mubr.msk.f32.vlgmr.msra.gmra.mrb[0].mxu1 %vm1626_vm2, %v1912_v11 }
 0x351   : > { %2434 = vmatpush3.bf16.msra.mxu1 %v2433_v37  ;;  %2390 = vmatprep.mubr.msk.f32.mxu1 %vm2607_vm1, %v2608_v23  ;;  %v1882_v23 = vld [vmem:[%s3566_s5 + $0x38] sm:$0xff] }
 0x352   : > { %2435 = vmatprep.subr.bf16.mxu1 %v2606_v56  ;;  %v2442_v43 = vpack.c.bf16 %v1882_v23, %v1881_v32 }
 0x355   : > { %2437 = vmatpush3.bf16.msra.mxu1 %v2436_v28 }
 0x356   : > { %2438 = vmatprep.subr.bf16.mxu1 %v2606_v56 }
 0x359   : > { %2440 = vmatpush3.bf16.msra.mxu1 %v2439_v14 }
 0x35a   : > { %2441 = vmatprep.subr.bf16.mxu1 %v2606_v56  ;;  %v2270_v56 = vld [vmem:[%s3570_s9] ss:$0 sm:$0xff] }
 0x35d   : > { %2443 = vmatpush3.bf16.msra.mxu1 %v2442_v43 }
 0x360   : > { %2391 = vmatmul.mubr.msk.f32.vlgmr.msra.gmra.mrb[2].mxu1 %vm1626_vm2, %v3455_v25 }
 0x423   : > { %v1981_v0 = vpop.f32.mrb[0].mxu1 }
 0x424   : > { %v2373_v62 = vpop.f32.mrb[1].mxu1 }
 0x433   : > { %v2068_v1 = vpop.f32.mrb[2].mxu1 }
 0x434   : > { %v2069_v12 = vadd.f32 %v2068_v1, %v1981_v0  ;;  %v2392_v18 = vpop.f32.mrb[3].mxu1 }
 0x436   : > { %v2079_v27 = vadd.f32 %v2269_v45, %v2069_v12 }
 0x438   : > { %v2080_v51 = vmax.f32 %v2079_v27, 0.0 }
 0x43a   : > { %2410 = vmatmul.mubr.msk.f32.vlgmr.msra.gmra.mrb[16].mxu0 %vm1626_vm2, %v2080_v51 }
 0x50d   : > { %v2165_v25 = vpop.f32.mrb[16].mxu0 }
 0x50e   : > { %v2166_v61 = vadd.f32 %v2270_v56, %v2165_v25  ;;  %v2411_v54 = vpop.f32.mrb[17].mxu0 }
 0x510   : > { %2169 = vst [vmem:[%s350_s11] sm:$0xff] %v2166_v61 }
 0x511   : > { %2547 = shalt.err (!%p2544_p3)
}
 0x512   : > { %s2548_s26 = scalar_lea.hbm %s3519_s21, 128  ;;  %s2552_s18 = scalar_lea.hbm %s3571_s10, 256 }
 0x513   : > { %p2549_p4 = scmp.ne.s32.totalorder %s3519_s21, %s2548_s26  ;;  %p2553_p9 = scmp.lt.u32.totalorder %s3519_s21, %s3571_s10 }
 0x514   : > { %p2554_p10 = scmp.lt.u32.totalorder %s2552_s18, %s2548_s26  ;;  %p2556_p12 = scmp.lt.u32.totalorder %s2548_s26, %s3519_s21 }
 0x515   : > { %p2550_p7 = pnand %p2549_p4, %p2703_p5 }
 0x516   : > { %p2555_p11 = por %p2554_p10, %p2553_p9 }
 0x517   : > { %p2551_p8 = pneg %p2550_p7 }
 0x518   : > { %p2557_p13 = por %p2556_p12, %p2555_p11 }
 0x51a   : > { %p2558_p0 = pnand %p2557_p13, %p2551_p8 }
 0x51c   : > { %2561 = shalt.err (!%p2558_p0)
}
 0x51d   : > { %2456 = dma.vmem_to_hbm [thread:$0]  (%p2703_p5), %s3521_s12, 128, %s3519_s21, %s2171_s25  }
 0x51e PF: > { %p2462_p1 = scmp.ge.s32.totalorder %s2596_s16, 2  ;;  %s2196_s28 = sand.u32 1, %s2584_s13  }
 0x51f   : > { %s2197_s27 = scalar_lea.sflag [#allocation3], %s2196_s28 }
 0x520   : > { %p2459_p2 = pnand %p2462_p1, %p2707_p6 }
 0x522   : > { %2579 = dma.done.wait (!%p2459_p2), %s2197_s27, 128  }
 0x523   : > { %2581 = vsyncadd (!%p2459_p2), %s2197_s27, 4294967168  ;;  %p20_p3 = scmp.ge.s32.totalorder %s2690_s19, 4   ;;  %s3574_s13 = smov %s2588_s14 }
 0x524   : > { %s3575_s14 = smov %s2592_s15  ;;  %s3576_s15 = smov %s2701_s22 }
 0x525   : > { %s3577_s16 = smov %s2690_s19  ;;  %22 = sbr.rel (!%p20_p3) target bundleno = 3 (0x3), region = 95 }
 0x52c   :  { %2202 = vsyncpa [#allocation3], 1 }
 0x52d   :  { %2204 = vsyncpa [#allocation3 + $0x1], 1 }

</bundles_post_ra>
